<compile_context>
chip_gen: v5e
topology: v5e:2x2
jax: 0.10.0
libtpu: 0.0.40
codegen_flags: <defaults>
</compile_context>

<pallas_src>
import functools

import jax
import jax.numpy as jnp
from jax.experimental import pallas as pl
from jax.experimental.pallas import tpu as pltpu

EPS = 1e-5


# ----------------------------- Pallas kernel -----------------------------

def _fused_mlp_kernel(x_ref, w1_ref, b1_ref, w2_ref, b2_ref,
                      w3_ref, b3_ref, w4_ref, b4_ref, o_ref):
    """relu(x@w1+b1) -> relu(.@w2+b2) -> relu(.@w3+b3) -> .@w4+b4, fully in VMEM.

    Weights / activations feeding the MXU are bf16; accumulation, bias add and ReLU
    run in f32 on the VPU. BatchNorms are already folded into (w, b)."""
    h = jnp.dot(x_ref[...], w1_ref[...], preferred_element_type=jnp.float32)
    h = jnp.maximum(h + b1_ref[...], 0.0)
    h = jnp.dot(h.astype(w2_ref.dtype), w2_ref[...], preferred_element_type=jnp.float32)
    h = jnp.maximum(h + b2_ref[...], 0.0)
    h = jnp.dot(h.astype(w3_ref.dtype), w3_ref[...], preferred_element_type=jnp.float32)
    h = jnp.maximum(h + b3_ref[...], 0.0)
    out = jnp.dot(h.astype(w4_ref.dtype), w4_ref[...], preferred_element_type=jnp.float32)
    o_ref[...] = out + b4_ref[...]


def _pick_row_tile(m):
    """Largest multiple-of-8 row tile <= 256 dividing m; prefer >= 2 grid steps (v7x 2 TCs)."""
    best = None
    t = 8
    while t <= min(m, 256):
        if m % t == 0:
            best = t
        t += 8
    if best is None:
        return None
    if m // best == 1 and best >= 16 and (best // 2) % 8 == 0:
        best //= 2  # split into 2 parallel steps for v7x megacore; harmless elsewhere
    return best


@functools.partial(jax.jit, static_argnames=("binary",))
def mlp_decoder_forward(x, fp, binary=1):
    """x: (M, in_dim) f32.  fp: folded / pre-transposed / bf16 params from prep_params()."""
    m, in_dim = x.shape
    w1, b1 = fp["w1"], fp["b1"]
    w2, b2 = fp["w2"], fp["b2"]
    w3, b3 = fp["w3"], fp["b3"]
    w4, b4 = fp["w4"], fp["b4"]
    assert w1.shape[0] == in_dim
    h1, h2, h3 = w1.shape[1], w2.shape[1], w3.shape[1]
    n_out = w4.shape[1]  # lane-padded multiple of 128

    xb = x.astype(jnp.bfloat16)
    tm = _pick_row_tile(m)
    mp = m
    if tm is None:  # ragged M fallback (not hit in the demo): pad rows, slice after
        tm = min(256, ((m + 7) // 8) * 8)
        mp = ((m + tm - 1) // tm) * tm
        xb = jnp.pad(xb, ((0, mp - m), (0, 0)))

    out = pl.pallas_call(
        _fused_mlp_kernel,
        out_shape=jax.ShapeDtypeStruct((mp, n_out), jnp.float32),
        grid=(mp // tm,),
        in_specs=[
            pl.BlockSpec((tm, in_dim), lambda i: (i, 0)),
            pl.BlockSpec((in_dim, h1), lambda i: (0, 0)),
            pl.BlockSpec((1, h1), lambda i: (0, 0)),
            pl.BlockSpec((h1, h2), lambda i: (0, 0)),
            pl.BlockSpec((1, h2), lambda i: (0, 0)),
            pl.BlockSpec((h2, h3), lambda i: (0, 0)),
            pl.BlockSpec((1, h3), lambda i: (0, 0)),
            pl.BlockSpec((h3, n_out), lambda i: (0, 0)),
            pl.BlockSpec((1, n_out), lambda i: (0, 0)),
        ],
        out_specs=pl.BlockSpec((tm, n_out), lambda i: (i, 0)),
        compiler_params=pltpu.CompilerParams(dimension_semantics=("parallel",)),
    )(xb, w1, b1, w2, b2, w3, b3, w4, b4)
    return out[:m, :binary]


# ----------------------------- parameter prep (BN fold) -----------------------------

def prep_params(tp, binary=1):
    """Fold eval-mode BN into the following linear, pre-transpose weights to (in, out),
    cast GEMM weights to bf16 (biases stay f32), lane-pad the binary head to 128 outputs."""
    def bn_affine(bn):
        a = bn["gamma"] * jax.lax.rsqrt(bn["var"] + EPS)
        c = bn["beta"] - bn["mean"] * a
        return a, c

    a1, c1 = bn_affine(tp["bn1"])
    a2, c2 = bn_affine(tp["bn2"])
    a3, c3 = bn_affine(tp["bn3"])

    w1 = tp["W1"].T                     # fc1 untouched (bn1 sits after its ReLU)
    b1 = tp["b1"]
    w2 = (tp["W2"] * a1[None, :]).T     # bn1 folded into fc2's input side
    b2 = tp["W2"] @ c1 + tp["b2"]
    w3 = (tp["W3"] * a2[None, :]).T     # bn2 folded into fc3
    b3 = tp["W3"] @ c2 + tp["b3"]
    w4 = (tp["W4"] * a3[None, :]).T     # bn3 folded into fc4
    b4 = tp["W4"] @ c3 + tp["b4"]

    n_pad = ((binary + 127) // 128) * 128
    w4 = jnp.pad(w4, ((0, 0), (0, n_pad - binary)))
    b4 = jnp.pad(b4, ((0, n_pad - binary),))

    bf16 = lambda w: w.astype(jnp.bfloat16)
    row = lambda b: b.reshape(1, -1).astype(jnp.float32)
    return {"w1": bf16(w1), "b1": row(b1),
            "w2": bf16(w2), "b2": row(b2),
            "w3": bf16(w3), "b3": row(b3),
            "w4": bf16(w4), "b4": row(b4)}


# ----------------------------- torch-layout params & reference -----------------------------

def build_torch_params(key, in_dim, hidden_dim, out_dim, binary=1):
    def linear_init(k, fan_out, fan_in):
        k1, k2 = jax.random.split(k)
        bound = 1.0 / jnp.sqrt(jnp.float32(fan_in))
        w = jax.random.uniform(k1, (fan_out, fan_in), jnp.float32, -bound, bound)
        b = jax.random.uniform(k2, (fan_out,), jnp.float32, -bound, bound)
        return w, b

    def bn_init(k, c):
        k1, k2, k3, k4 = jax.random.split(k, 4)
        return {"gamma": 1.0 + 0.1 * jax.random.normal(k1, (c,), jnp.float32),
                "beta": 0.1 * jax.random.normal(k2, (c,), jnp.float32),
                "mean": 0.1 * jax.random.normal(k3, (c,), jnp.float32),
                "var": 1.0 + 0.1 * jax.random.uniform(k4, (c,), jnp.float32)}

    ks = jax.random.split(key, 7)
    w1, b1 = linear_init(ks[0], hidden_dim, in_dim)
    w2, b2 = linear_init(ks[1], hidden_dim, hidden_dim)
    w3, b3 = linear_init(ks[2], out_dim, hidden_dim)
    w4, b4 = linear_init(ks[3], binary, out_dim)
    return {"W1": w1, "b1": b1, "bn1": bn_init(ks[4], hidden_dim),
            "W2": w2, "b2": b2, "bn2": bn_init(ks[5], hidden_dim),
            "W3": w3, "b3": b3, "bn3": bn_init(ks[6], out_dim),
            "W4": w4, "b4": b4}


def ref_forward(x, tp):
    """Pure-JAX f32 reference implementing the exact torch graph (unfused, unfolded)."""
    def bn(h, p):
        return p["gamma"] * (h - p["mean"]) * jax.lax.rsqrt(p["var"] + EPS) + p["beta"]
    h = bn(jax.nn.relu(x @ tp["W1"].T + tp["b1"]), tp["bn1"])
    h = bn(jax.nn.relu(h @ tp["W2"].T + tp["b2"]), tp["bn2"])
    h = bn(jax.nn.relu(h @ tp["W3"].T + tp["b3"]), tp["bn3"])
    return h @ tp["W4"].T + tp["b4"]


# ----------------------------- demo -----------------------------

if __name__ == "__main__":
    IN_DIM, HIDDEN, OUT_DIM, BINARY = 256, 512, 128, 1   # MLPDecoder(256, 512, 128, 1)
    BATCH = 16

    key = jax.random.PRNGKey(0)
    kx, kp = jax.random.split(key)
    x = jax.random.normal(kx, (BATCH, IN_DIM), jnp.float32)
    torch_params = build_torch_params(kp, IN_DIM, HIDDEN, OUT_DIM, BINARY)
    folded = prep_params(torch_params, BINARY)

    y = mlp_decoder_forward(x, folded, binary=BINARY)
    jax.block_until_ready(y)

    assert y.shape == (BATCH, BINARY)
    y_ref = ref_forward(x, torch_params)
    err = float(jnp.max(jnp.abs(y - y_ref)))
    assert err < 5e-2, f"max abs err vs f32 reference: {err}"
    print("KERNEL_OK")
</pallas_src>

<mosaic_0001>
module attributes {stable_mosaic.version = 11 : i64} {
  func.func @_fused_mlp_kernel(%arg0: i32, %arg1: memref<8x256xbf16, #tpu.memory_space<vmem>>, %arg2: memref<256x512xbf16, #tpu.memory_space<vmem>>, %arg3: memref<1x512xf32, #tpu.memory_space<vmem>>, %arg4: memref<512x512xbf16, #tpu.memory_space<vmem>>, %arg5: memref<1x512xf32, #tpu.memory_space<vmem>>, %arg6: memref<512x128xbf16, #tpu.memory_space<vmem>>, %arg7: memref<1x128xf32, #tpu.memory_space<vmem>>, %arg8: memref<128x128xbf16, #tpu.memory_space<vmem>>, %arg9: memref<1x128xf32, #tpu.memory_space<vmem>>, %arg10: memref<8x128xf32, #tpu.memory_space<vmem>>) attributes {dimension_semantics = [#tpu.dimension_semantics<parallel>], iteration_bounds = array<i64: 2>, scalar_prefetch = 0 : i64, scratch_operands = 0 : i64, tpu.core_type = #tpu.core_type<tc>, window_params = [{transform_indices = @transform_0, window_bounds = array<i64: 8, 256>}, {pipeline_mode = #tpu.pipeline_mode<synchronous>, transform_indices = @transform_1, window_bounds = array<i64: 256, 512>}, {pipeline_mode = #tpu.pipeline_mode<synchronous>, transform_indices = @transform_2, window_bounds = array<i64: 1, 512>}, {pipeline_mode = #tpu.pipeline_mode<synchronous>, transform_indices = @transform_3, window_bounds = array<i64: 512, 512>}, {pipeline_mode = #tpu.pipeline_mode<synchronous>, transform_indices = @transform_4, window_bounds = array<i64: 1, 512>}, {pipeline_mode = #tpu.pipeline_mode<synchronous>, transform_indices = @transform_5, window_bounds = array<i64: 512, 128>}, {pipeline_mode = #tpu.pipeline_mode<synchronous>, transform_indices = @transform_6, window_bounds = array<i64: 1, 128>}, {pipeline_mode = #tpu.pipeline_mode<synchronous>, transform_indices = @transform_7, window_bounds = array<i64: 128, 128>}, {pipeline_mode = #tpu.pipeline_mode<synchronous>, transform_indices = @transform_8, window_bounds = array<i64: 1, 128>}, {transform_indices = @transform_9, window_bounds = array<i64: 8, 128>}]} {
    %c0 = arith.constant 0 : index
    %c0_0 = arith.constant 0 : index
    %0 = vector.load %arg1[%c0, %c0_0] : memref<8x256xbf16, #tpu.memory_space<vmem>>, vector<8x256xbf16>
    %c0_1 = arith.constant 0 : index
    %c0_2 = arith.constant 0 : index
    %1 = vector.load %arg2[%c0_1, %c0_2] : memref<256x512xbf16, #tpu.memory_space<vmem>>, vector<256x512xbf16>
    %cst = arith.constant dense<0.000000e+00> : vector<8x512xf32>
    %2 = tpu.matmul %0, %1, %cst {dimension_numbers = #tpu.dot_dimension_numbers<[1], [0], [0], [1], [0, 0, 1, 1], [], []>} : vector<8x256xbf16>, vector<256x512xbf16>, vector<8x512xf32> -> vector<8x512xf32>
    %c0_3 = arith.constant 0 : index
    %c0_4 = arith.constant 0 : index
    %3 = vector.load %arg3[%c0_3, %c0_4] : memref<1x512xf32, #tpu.memory_space<vmem>>, vector<1x512xf32>
    %4 = vector.broadcast %3 : vector<1x512xf32> to vector<8x512xf32>
    %5 = arith.addf %2, %4 : vector<8x512xf32>
    %cst_5 = arith.constant 0.000000e+00 : f32
    %6 = vector.broadcast %cst_5 : f32 to vector<8x512xf32>
    %7 = arith.maximumf %5, %6 : vector<8x512xf32>
    %8 = arith.truncf %7 : vector<8x512xf32> to vector<8x512xbf16>
    %c0_6 = arith.constant 0 : index
    %c0_7 = arith.constant 0 : index
    %9 = vector.load %arg4[%c0_6, %c0_7] : memref<512x512xbf16, #tpu.memory_space<vmem>>, vector<512x512xbf16>
    %cst_8 = arith.constant dense<0.000000e+00> : vector<8x512xf32>
    %10 = tpu.matmul %8, %9, %cst_8 {dimension_numbers = #tpu.dot_dimension_numbers<[1], [0], [0], [1], [0, 0, 1, 1], [], []>} : vector<8x512xbf16>, vector<512x512xbf16>, vector<8x512xf32> -> vector<8x512xf32>
    %c0_9 = arith.constant 0 : index
    %c0_10 = arith.constant 0 : index
    %11 = vector.load %arg5[%c0_9, %c0_10] : memref<1x512xf32, #tpu.memory_space<vmem>>, vector<1x512xf32>
    %12 = vector.broadcast %11 : vector<1x512xf32> to vector<8x512xf32>
    %13 = arith.addf %10, %12 : vector<8x512xf32>
    %cst_11 = arith.constant 0.000000e+00 : f32
    %14 = vector.broadcast %cst_11 : f32 to vector<8x512xf32>
    %15 = arith.maximumf %13, %14 : vector<8x512xf32>
    %16 = arith.truncf %15 : vector<8x512xf32> to vector<8x512xbf16>
    %c0_12 = arith.constant 0 : index
    %c0_13 = arith.constant 0 : index
    %17 = vector.load %arg6[%c0_12, %c0_13] : memref<512x128xbf16, #tpu.memory_space<vmem>>, vector<512x128xbf16>
    %cst_14 = arith.constant dense<0.000000e+00> : vector<8x128xf32>
    %18 = tpu.matmul %16, %17, %cst_14 {dimension_numbers = #tpu.dot_dimension_numbers<[1], [0], [0], [1], [0, 0, 1, 1], [], []>} : vector<8x512xbf16>, vector<512x128xbf16>, vector<8x128xf32> -> vector<8x128xf32>
    %c0_15 = arith.constant 0 : index
    %c0_16 = arith.constant 0 : index
    %19 = vector.load %arg7[%c0_15, %c0_16] : memref<1x128xf32, #tpu.memory_space<vmem>>, vector<1x128xf32>
    %20 = vector.broadcast %19 : vector<1x128xf32> to vector<8x128xf32>
    %21 = arith.addf %18, %20 : vector<8x128xf32>
    %cst_17 = arith.constant 0.000000e+00 : f32
    %22 = vector.broadcast %cst_17 : f32 to vector<8x128xf32>
    %23 = arith.maximumf %21, %22 : vector<8x128xf32>
    %24 = arith.truncf %23 : vector<8x128xf32> to vector<8x128xbf16>
    %c0_18 = arith.constant 0 : index
    %c0_19 = arith.constant 0 : index
    %25 = vector.load %arg8[%c0_18, %c0_19] : memref<128x128xbf16, #tpu.memory_space<vmem>>, vector<128x128xbf16>
    %cst_20 = arith.constant dense<0.000000e+00> : vector<8x128xf32>
    %26 = tpu.matmul %24, %25, %cst_20 {dimension_numbers = #tpu.dot_dimension_numbers<[1], [0], [0], [1], [0, 0, 1, 1], [], []>} : vector<8x128xbf16>, vector<128x128xbf16>, vector<8x128xf32> -> vector<8x128xf32>
    %c0_21 = arith.constant 0 : index
    %c0_22 = arith.constant 0 : index
    %27 = vector.load %arg9[%c0_21, %c0_22] : memref<1x128xf32, #tpu.memory_space<vmem>>, vector<1x128xf32>
    %28 = vector.broadcast %27 : vector<1x128xf32> to vector<8x128xf32>
    %29 = arith.addf %26, %28 : vector<8x128xf32>
    %c0_23 = arith.constant 0 : index
    %c0_24 = arith.constant 0 : index
    %30 = vector.load %arg10[%c0_23, %c0_24] : memref<8x128xf32, #tpu.memory_space<vmem>>, vector<8x128xf32>
    tpu.vector_store %arg10[%c0_23, %c0_24], %29 {strides = array<i32>} : memref<8x128xf32, #tpu.memory_space<vmem>>, vector<8x128xf32>,
    return
  }
  func.func @transform_0(%arg0: i32) -> (i32, i32) {
    %c0_i32 = arith.constant 0 : i32
    %c0_i32_0 = arith.constant 0 : i32
    return %arg0, %c0_i32 : i32, i32
  }
  func.func @transform_1(%arg0: i32) -> (i32, i32) {
    %c0_i32 = arith.constant 0 : i32
    %c0_i32_0 = arith.constant 0 : i32
    %c0_i32_1 = arith.constant 0 : i32
    return %c0_i32, %c0_i32_0 : i32, i32
  }
  func.func @transform_2(%arg0: i32) -> (i32, i32) {
    %c0_i32 = arith.constant 0 : i32
    %c0_i32_0 = arith.constant 0 : i32
    %c0_i32_1 = arith.constant 0 : i32
    return %c0_i32, %c0_i32_0 : i32, i32
  }
  func.func @transform_3(%arg0: i32) -> (i32, i32) {
    %c0_i32 = arith.constant 0 : i32
    %c0_i32_0 = arith.constant 0 : i32
    %c0_i32_1 = arith.constant 0 : i32
    return %c0_i32, %c0_i32_0 : i32, i32
  }
  func.func @transform_4(%arg0: i32) -> (i32, i32) {
    %c0_i32 = arith.constant 0 : i32
    %c0_i32_0 = arith.constant 0 : i32
    %c0_i32_1 = arith.constant 0 : i32
    return %c0_i32, %c0_i32_0 : i32, i32
  }
  func.func @transform_5(%arg0: i32) -> (i32, i32) {
    %c0_i32 = arith.constant 0 : i32
    %c0_i32_0 = arith.constant 0 : i32
    %c0_i32_1 = arith.constant 0 : i32
    return %c0_i32, %c0_i32_0 : i32, i32
  }
  func.func @transform_6(%arg0: i32) -> (i32, i32) {
    %c0_i32 = arith.constant 0 : i32
    %c0_i32_0 = arith.constant 0 : i32
    %c0_i32_1 = arith.constant 0 : i32
    return %c0_i32, %c0_i32_0 : i32, i32
  }
  func.func @transform_7(%arg0: i32) -> (i32, i32) {
    %c0_i32 = arith.constant 0 : i32
    %c0_i32_0 = arith.constant 0 : i32
    %c0_i32_1 = arith.constant 0 : i32
    return %c0_i32, %c0_i32_0 : i32, i32
  }
  func.func @transform_8(%arg0: i32) -> (i32, i32) {
    %c0_i32 = arith.constant 0 : i32
    %c0_i32_0 = arith.constant 0 : i32
    %c0_i32_1 = arith.constant 0 : i32
    return %c0_i32, %c0_i32_0 : i32, i32
  }
  func.func @transform_9(%arg0: i32) -> (i32, i32) {
    %c0_i32 = arith.constant 0 : i32
    %c0_i32_0 = arith.constant 0 : i32
    return %arg0, %c0_i32 : i32, i32
  }
}

</mosaic_0001>

<bundles_post_ra>
// kernel: mlp_decoder_forward.1
= control target key start
LH: loop header
LB: loop body
LE: loop exit
PB: predicated region body
PF: predicated region fallthrough
CT: control target
= control target key end

     0   :  { %14 = vsyncpa [#allocation3], 0  ;;  %s3965_s0 = inlined_call_operand.vmem [shape: bf16[16,256], index: 0, kind: input, shape index: {}]   ;;  %s3966_s1 = inlined_call_operand.hbm [shape: bf16[256,512], index: 1, kind: input, shape index: {}]   ;;  %s3967_s2 = inlined_call_operand.vmem [shape: f32[1,512], index: 2, kind: input, shape index: {}]   ;;  %s3968_s3 = inlined_call_operand.hbm [shape: bf16[512,512], index: 3, kind: input, shape index: {}]   ;;  %s3969_s4 = inlined_call_operand.vmem [shape: f32[1,512], index: 4, kind: input, shape index: {}]   ;;  %s3970_s5 = inlined_call_operand.hbm [shape: bf16[512,128], index: 5, kind: input, shape index: {}]   ;;  %s3971_s6 = inlined_call_operand.vmem [shape: f32[1,128], index: 6, kind: input, shape index: {}]   ;;  %s3972_s7 = inlined_call_operand.hbm [shape: bf16[128,128], index: 7, kind: input, shape index: {}]   ;;  %s3973_s8 = inlined_call_operand.vmem [shape: f32[1,128], index: 8, kind: input, shape index: {}]   ;;  %s3974_s9 = inlined_call_operand.vmem [shape: f32[16,128], index: 9, kind: output, shape index: {}]  }
   0x1   :  { %15 = vsyncpa [#allocation5], 0 }
   0x2   :  { %16 = vsyncpa [#allocation8], 0  ;;  %s3828_s30 = smov 0  }
   0x3 LB: > { %s3834_s10 = sadd.s32 4294967295, %s3768_s30   ;;  %p2398_p0 = scmp.ge.s32.totalorder %s3768_s30, 1  ;;  %s3768_s30 = sphi %s3828_s30, %s22_s30  }
   0x4   : > { %p247_p1 = scmp.lt.s32.totalorder %s3768_s30, 3  ;;  %p3604_p2 = scmp.eq.s32.totalorder %s3834_s10, 0 }
   0x5   : > { %s275_s13 = sshll.u32 %s3968_s3, 4  ;;  %s258_s17 = sshll.u32 %s3966_s1, 4  ;;  %s276_s13 = int_to_ptr.hbm [resolvable:$true] %s275_s13  ;;  %s259_s17 = int_to_ptr.hbm [resolvable:$true] %s258_s17 }
   0x6   : > { %p3842_p3 = pnand %p2398_p0, %p247_p1  ;;  %s3770_s18 = smov [#allocation4]  }
   0x7   : > { %s277_s19 = sshll.u32 %s3770_s18, 4  ;;  %s3771_s21 = smov [#allocation2]   ;;  %s278_s19 = int_to_ptr.vmem [resolvable:$true] %s277_s19 }
   0x8   : > { %p3591_p4 = pneg %p3842_p3  ;;  %s260_s22 = sshll.u32 %s3771_s21, 4  ;;  %s261_s22 = int_to_ptr.vmem [resolvable:$true] %s260_s22 }
   0x9   : > { %s292_s25 = sshll.u32 %s3970_s5, 4  ;;  %s3772_s26 = smov 256   ;;  %s293_s25 = int_to_ptr.hbm [resolvable:$true] %s292_s25 }
   0xa   : > { %p3853_p5 = pnand %p3604_p2, %p3591_p4  ;;  %s3773_s27 = smov 16  }
   0xb   : > { %s3774_s28 = smov [#allocation6]   ;;  %s3775_s11 = smov 64  }
   0xc   : > { %3597 = dma.hbm_to_vmem [thread:$0]  (!%p3853_p5), %s276_s13, 16384, %s278_s19, [#allocation5], %s3772_s26, %s3772_s26, %s3773_s27  }
   0xd   : > { %3594 = dma.hbm_to_vmem [thread:$0]  (!%p3853_p5), %s259_s17, 8192, %s261_s22, [#allocation3], %s3772_s26, %s3772_s26, %s3773_s27  }
   0xe   : > { %s294_s29 = sshll.u32 %s3774_s28, 4  ;;  %s3776_s12 = smov 4   ;;  %s295_s29 = int_to_ptr.vmem [resolvable:$true] %s294_s29 }
   0xf   : > { %3600 = dma.hbm_to_vmem [thread:$0]  (!%p3853_p5), %s293_s25, 4096, %s295_s29, [#allocation5], %s3775_s11, %s3775_s11, %s3776_s12  }
  0x10   : > { %s309_s18 = sshll.u32 %s3972_s7, 4  ;;  %s3777_s21 = smov [#allocation7]   ;;  %s310_s18 = int_to_ptr.hbm [resolvable:$true] %s309_s18 }
  0x11   : > { %s311_s23 = sshll.u32 %s3777_s21, 4  ;;  %338 = sbr.rel (%p3842_p3) target bundleno = 709 (0x2c5), region = 56  ;;  %s312_s23 = int_to_ptr.vmem [resolvable:$true] %s311_s23 }
  0x12   : > { %3603 = dma.hbm_to_vmem [thread:$0]  (!%p3853_p5), %s310_s18, 1024, %s312_s23, [#allocation8], %s3775_s11, %s3775_s11, %s3776_s12  }
  0x16   : > { %3755 = dma.done.wait (%p3604_p2), [#allocation3], 8192  }
  0x17   : > { %3757 = vsyncadd (%p3604_p2), [#allocation3], 4294959104 }
  0x18   : > { %3759 = dma.done.wait (%p3604_p2), [#allocation5], 20480  }
  0x19   : > { %3761 = vsyncadd (%p3604_p2), [#allocation5], 4294946816 }
  0x1a   : > { %3763 = dma.done.wait (%p3604_p2), [#allocation8], 1024  }
  0x1b   : > { %3765 = vsyncadd (%p3604_p2), [#allocation8], 4294966272  ;;  %v2526_v0 = vld [vmem:[#allocation2 + $0xe0] sm:$0xf]  ;;  %v3373_v1 = vld [vmem:[#allocation2 + $0xec] sm:$0xf0] }
  0x1c   : > { %v2654_v2 = vld [vmem:[#allocation2 + $0x1e0] sm:$0xf]  ;;  %v2527_v3 = vor.u32 %v3373_v1, %v2526_v0  ;;  %v3405_v4 = vld [vmem:[#allocation2 + $0x1ec] sm:$0xf0]  ;;  %v3371_v5 = vld [vmem:[#allocation2 + $0xe4] sm:$0xf] }
  0x1d   : > { %v2528_v6 = vld [vmem:[#allocation2 + $0xf0] sm:$0xf0]  ;;  %v2655_v7 = vor.u32 %v3405_v4, %v2654_v2  ;;  %v3403_v9 = vld [vmem:[#allocation2 + $0x1e4] sm:$0xf]  ;;  %v2510_v11 = vld [vmem:[#allocation2 + $0xc0] sm:$0xf] }
  0x1e   : > { %v2531_v8 = vor.u32 %v3371_v5, %v2528_v6  ;;  %v2656_v10 = vld [vmem:[#allocation2 + $0x1f0] sm:$0xf0]  ;;  %800 = vmatpush.bf16.msra.mxu0 %v2527_v3  ;;  %v3369_v13 = vld [vmem:[#allocation2 + $0xcc] sm:$0xf0]  ;;  %v2638_v14 = vld [vmem:[#allocation2 + $0x1c0] sm:$0xf] }
  0x1f   : > { %v2659_v12 = vor.u32 %v3403_v9, %v2656_v10  ;;  %v3401_v15 = vld [vmem:[#allocation2 + $0x1cc] sm:$0xf0]  ;;  %813 = vmatpush.bf16.msra.mxu1 %v2655_v7  ;;  %v2511_v16 = vor.u32 %v3369_v13, %v2510_v11  ;;  %v3367_v18 = vld [vmem:[#allocation2 + $0xc4] sm:$0xf]  ;;  %v2512_v19 = vld [vmem:[#allocation2 + $0xd0] sm:$0xf0] }
  0x20   : > { %826 = vmatpush.bf16.msra.mxu2 %v2531_v8  ;;  %v2639_v17 = vor.u32 %v3401_v15, %v2638_v14  ;;  %v3399_v20 = vld [vmem:[#allocation2 + $0x1c4] sm:$0xf]  ;;  %v2515_v21 = vor.u32 %v3367_v18, %v2512_v19  ;;  %v2640_v22 = vld [vmem:[#allocation2 + $0x1d0] sm:$0xf0]  ;;  %v2494_v23 = vld [vmem:[#allocation2 + $0xa0] sm:$0xf] }
  0x21   : > { %839 = vmatpush.bf16.msra.mxu3 %v2659_v12  ;;  %v3365_v24 = vld [vmem:[#allocation2 + $0xac] sm:$0xf0]  ;;  %v2643_v25 = vor.u32 %v3399_v20, %v2640_v22  ;;  %v2622_v26 = vld [vmem:[#allocation2 + $0x1a0] sm:$0xf]  ;;  %v3363_v28 = vld [vmem:[#allocation2 + $0xa4] sm:$0xf] }
  0x22   : > { %v3397_v27 = vld [vmem:[#allocation2 + $0x1ac] sm:$0xf0]  ;;  %801 = vmatpush.bf16.msra.mxu0 %v2511_v16  ;;  %v2495_v29 = vor.u32 %v3365_v24, %v2494_v23  ;;  %v2496_v30 = vld [vmem:[#allocation2 + $0xb0] sm:$0xf0]  ;;  %v3395_v31 = vld [vmem:[#allocation2 + $0x1a4] sm:$0xf] }
  0x23   : > { %v2624_v32 = vld [vmem:[#allocation2 + $0x1b0] sm:$0xf0]  ;;  %814 = vmatpush.bf16.msra.mxu1 %v2639_v17  ;;  %v2623_v33 = vor.u32 %v3397_v27, %v2622_v26  ;;  %v2499_v34 = vor.u32 %v3363_v28, %v2496_v30  ;;  %v2478_v35 = vld [vmem:[#allocation2 + $0x80] sm:$0xf]  ;;  %v3361_v36 = vld [vmem:[#allocation2 + $0x8c] sm:$0xf0] }
  0x24   : > { %827 = vmatpush.bf16.msra.mxu2 %v2515_v21  ;;  %v2606_v37 = vld [vmem:[#allocation2 + $0x180] sm:$0xf]  ;;  %v2627_v38 = vor.u32 %v3395_v31, %v2624_v32  ;;  %v3393_v39 = vld [vmem:[#allocation2 + $0x18c] sm:$0xf0]  ;;  %v3359_v40 = vld [vmem:[#allocation2 + $0x84] sm:$0xf]  ;;  %v2479_v44 = vor.u32 %v3361_v36, %v2478_v35 }
  0x25   : > { %840 = vmatpush.bf16.msra.mxu3 %v2643_v25  ;;  %v2480_v41 = vld [vmem:[#allocation2 + $0x90] sm:$0xf0]  ;;  %v3391_v42 = vld [vmem:[#allocation2 + $0x184] sm:$0xf]  ;;  %p389_p6 = scmp.lt.s32.totalorder %s3834_s10, 1  ;;  %v2607_v45 = vor.u32 %v3393_v39, %v2606_v37 }
  0x26   : > { %v2608_v43 = vld [vmem:[#allocation2 + $0x190] sm:$0xf0]  ;;  %802 = vmatpush.bf16.msra.mxu0 %v2495_v29  ;;  %v2483_v46 = vor.u32 %v3359_v40, %v2480_v41  ;;  %v2462_v47 = vld [vmem:[#allocation2 + $0x60] sm:$0xf]  ;;  %v3357_v48 = vld [vmem:[#allocation2 + $0x6c] sm:$0xf0] }
  0x27   : > { %815 = vmatpush.bf16.msra.mxu1 %v2623_v33  ;;  %v2590_v49 = vld [vmem:[#allocation2 + $0x160] sm:$0xf]  ;;  %v2611_v50 = vor.u32 %v3391_v42, %v2608_v43  ;;  %v3389_v51 = vld [vmem:[#allocation2 + $0x16c] sm:$0xf0]  ;;  %v3355_v52 = vld [vmem:[#allocation2 + $0x64] sm:$0xf]  ;;  %v2463_v56 = vor.u32 %v3357_v48, %v2462_v47 }
  0x28   : > { %828 = vmatpush.bf16.msra.mxu2 %v2499_v34  ;;  %v2464_v53 = vld [vmem:[#allocation2 + $0x70] sm:$0xf0]  ;;  %v3387_v54 = vld [vmem:[#allocation2 + $0x164] sm:$0xf]  ;;  %s3978_s10 = smov (!%p389_p6, %s3834_s10), 1  ;;  %v2591_v57 = vor.u32 %v3389_v51, %v2590_v49 }
  0x29   : > { %841 = vmatpush.bf16.msra.mxu3 %v2627_v38  ;;  %v2592_v55 = vld [vmem:[#allocation2 + $0x170] sm:$0xf0]  ;;  %v2467_v58 = vor.u32 %v3355_v52, %v2464_v53  ;;  %v2446_v59 = vld [vmem:[#allocation2 + $0x40] sm:$0xf]  ;;  %v3353_v60 = vld [vmem:[#allocation2 + $0x4c] sm:$0xf0] }
  0x2a   : > { %803 = vmatpush.bf16.msra.mxu0 %v2479_v44  ;;  %v2574_v61 = vld [vmem:[#allocation2 + $0x140] sm:$0xf]  ;;  %v2595_v62 = vor.u32 %v3387_v54, %v2592_v55  ;;  %v3385_v63 = vld [vmem:[#allocation2 + $0x14c] sm:$0xf0]  ;;  %v3351_v0 = vld [vmem:[#allocation2 + $0x44] sm:$0xf]  ;;  %v2447_v4 = vor.u32 %v3353_v60, %v2446_v59 }
  0x2b   : > { %816 = vmatpush.bf16.msra.mxu1 %v2607_v45  ;;  %v2448_v1 = vld [vmem:[#allocation2 + $0x50] sm:$0xf0]  ;;  %v3383_v2 = vld [vmem:[#allocation2 + $0x144] sm:$0xf]  ;;  %s3342_s13 = sshll.u32 %s3978_s10, 3  ;;  %v2575_v5 = vor.u32 %v3385_v63, %v2574_v61 }
  0x2c   : > { %829 = vmatpush.bf16.msra.mxu2 %v2483_v46  ;;  %v2576_v3 = vld [vmem:[#allocation2 + $0x150] sm:$0xf0]  ;;  %v2451_v6 = vor.u32 %v3351_v0, %v2448_v1  ;;  %v2430_v7 = vld [vmem:[#allocation2 + $0x20] sm:$0xf]  ;;  %v3349_v8 = vld [vmem:[#allocation2 + $0x2c] sm:$0xf0]  ;;  %s393_s19 = scalar_lea.vmem %s3965_s0, %s3342_s13  ;;  %s397_s15 = scalar_lea.vmem %s3974_s9, %s3342_s13 }
  0x2d   : > { %842 = vmatpush.bf16.msra.mxu3 %v2611_v50  ;;  %v2558_v9 = vld [vmem:[#allocation2 + $0x120] sm:$0xf]  ;;  %v2579_v10 = vor.u32 %v3383_v2, %v2576_v3  ;;  %v3381_v11 = vld [vmem:[#allocation2 + $0x12c] sm:$0xf0]  ;;  %v3347_v12 = vld [vmem:[#allocation2 + $0x24] sm:$0xf]  ;;  %v2431_v16 = vor.u32 %v3349_v8, %v2430_v7 }
  0x2e   : > { %804 = vmatpush.bf16.msra.mxu0 %v2463_v56  ;;  %v2432_v13 = vld [vmem:[#allocation2 + $0x30] sm:$0xf0]  ;;  %v3379_v14 = vld [vmem:[#allocation2 + $0x124] sm:$0xf]  ;;  %v2414_v17 = vld [vmem:[#allocation2] sm:$0xf]  ;;  %v2559_v20 = vor.u32 %v3381_v11, %v2558_v9 }
  0x2f   : > { %817 = vmatpush.bf16.msra.mxu1 %v2591_v57  ;;  %v2560_v15 = vld [vmem:[#allocation2 + $0x130] sm:$0xf0]  ;;  %v3345_v18 = vld [vmem:[#allocation2 + $0xc] sm:$0xf0]  ;;  %v2542_v19 = vld [vmem:[#allocation2 + $0x100] sm:$0xf]  ;;  %v2435_v21 = vor.u32 %v3347_v12, %v2432_v13 }
  0x30   : > { %830 = vmatpush.bf16.msra.mxu2 %v2467_v58  ;;  %v3377_v22 = vld [vmem:[#allocation2 + $0x10c] sm:$0xf0]  ;;  %v3343_v23 = vld [vmem:[#allocation2 + $0x4] sm:$0xf]  ;;  %v2563_v25 = vor.u32 %v3379_v14, %v2560_v15  ;;  %v2416_v26 = vld [vmem:[#allocation2 + $0x10] sm:$0xf0]  ;;  %v2415_v32 = vor.u32 %v3345_v18, %v2414_v17 }
  0x31   : > { %843 = vmatpush.bf16.msra.mxu3 %v2595_v62  ;;  %v398_v24 = vld [vmem:[%s393_s19] sm:$0xff]  ;;  %v2544_v28 = vld [vmem:[#allocation2 + $0x110] sm:$0xf0]  ;;  %v2534_v29 = vld [vmem:[#allocation2 + $0xe8] sm:$0xf]  ;;  %v2543_v37 = vor.u32 %v3377_v22, %v2542_v19  ;;  %v2419_v38 = vor.u32 %v3343_v23, %v2416_v26 }
  0x32   : > { %805 = vmatpush.bf16.msra.mxu0 %v2447_v4  ;;  %v3375_v27 = vld [vmem:[#allocation2 + $0x104] sm:$0xf]  ;;  %v3374_v30 = vld [vmem:[#allocation2 + $0xf4] sm:$0xf0]  ;;  %v2662_v31 = vld [vmem:[#allocation2 + $0x1e8] sm:$0xf]  ;;  %v474_v36 = vunpack.c.l.b16 %v398_v24  ;;  %v475_v41 = vunpack.c.h.b16 %v398_v24 }
  0x33   : > { %818 = vmatpush.bf16.msra.mxu1 %v2575_v5  ;;  %v3406_v33 = vld [vmem:[#allocation2 + $0x1f4] sm:$0xf0]  ;;  %v3372_v34 = vld [vmem:[#allocation2 + $0xec] sm:$0xf]  ;;  %v2536_v35 = vld [vmem:[#allocation2 + $0xf8] sm:$0xf0]  ;;  %v2547_v42 = vor.u32 %v3375_v27, %v2544_v28  ;;  %v2535_v43 = vor.u32 %v3374_v30, %v2534_v29 }
  0x34   : > { %831 = vmatpush.bf16.msra.mxu2 %v2451_v6  ;;  %v3404_v39 = vld [vmem:[#allocation2 + $0x1ec] sm:$0xf]  ;;  %v2664_v40 = vld [vmem:[#allocation2 + $0x1f8] sm:$0xf0]  ;;  %v2663_v44 = vor.u32 %v3406_v33, %v2662_v31  ;;  %v2539_v45 = vor.u32 %v3372_v34, %v2536_v35  ;;  %v2518_v46 = vld [vmem:[#allocation2 + $0xc8] sm:$0xf]  ;;  %v3897_v50 = vpack.c.b16 %v474_v36, %v474_v36  ;;  %v3899_v54 = vpack.c.b16 %v475_v41, %v475_v41 }
  0x35   : > { %844 = vmatpush.bf16.msra.mxu3 %v2579_v10  ;;  %v3370_v47 = vld [vmem:[#allocation2 + $0xd4] sm:$0xf0]  ;;  %v2646_v48 = vld [vmem:[#allocation2 + $0x1c8] sm:$0xf]  ;;  %v2667_v49 = vor.u32 %v3404_v39, %v2664_v40  ;;  %v3368_v52 = vld [vmem:[#allocation2 + $0xcc] sm:$0xf] }
  0x36   : > { %806 = vmatpush.bf16.msra.mxu0 %v2431_v16  ;;  %v3402_v51 = vld [vmem:[#allocation2 + $0x1d4] sm:$0xf0]  ;;  %v2520_v53 = vld [vmem:[#allocation2 + $0xd8] sm:$0xf0]  ;;  %v3400_v55 = vld [vmem:[#allocation2 + $0x1cc] sm:$0xf]  ;;  %v2519_v57 = vor.u32 %v3370_v47, %v2518_v46 }
  0x37   : > { %819 = vmatpush.bf16.msra.mxu1 %v2559_v20  ;;  %v2648_v56 = vld [vmem:[#allocation2 + $0x1d8] sm:$0xf0]  ;;  %v2647_v58 = vor.u32 %v3402_v51, %v2646_v48  ;;  %v2523_v59 = vor.u32 %v3368_v52, %v2520_v53  ;;  %v2502_v60 = vld [vmem:[#allocation2 + $0xa8] sm:$0xf]  ;;  %v3366_v61 = vld [vmem:[#allocation2 + $0xb4] sm:$0xf0] }
  0x38   : > { %832 = vmatpush.bf16.msra.mxu2 %v2435_v21  ;;  %v2630_v62 = vld [vmem:[#allocation2 + $0x1a8] sm:$0xf]  ;;  %v2651_v63 = vor.u32 %v3400_v55, %v2648_v56  ;;  %v3398_v0 = vld [vmem:[#allocation2 + $0x1b4] sm:$0xf0]  ;;  %v3364_v1 = vld [vmem:[#allocation2 + $0xac] sm:$0xf]  ;;  %v2503_v5 = vor.u32 %v3366_v61, %v2502_v60 }
  0x39   : > { %845 = vmatpush.bf16.msra.mxu3 %v2563_v25  ;;  %v2504_v2 = vld [vmem:[#allocation2 + $0xb8] sm:$0xf0]  ;;  %v3396_v3 = vld [vmem:[#allocation2 + $0x1ac] sm:$0xf]  ;;  %v2631_v6 = vor.u32 %v3398_v0, %v2630_v62  ;;  %v2486_v8 = vld [vmem:[#allocation2 + $0x88] sm:$0xf] }
  0x3a   : > { %807 = vmatpush.bf16.msra.mxu0 %v2415_v32  ;;  %v2632_v4 = vld [vmem:[#allocation2 + $0x1b8] sm:$0xf0]  ;;  %v2507_v7 = vor.u32 %v3364_v1, %v2504_v2  ;;  %v3362_v9 = vld [vmem:[#allocation2 + $0x94] sm:$0xf0]  ;;  %v2614_v10 = vld [vmem:[#allocation2 + $0x188] sm:$0xf] }
  0x3b   : > { %820 = vmatpush.bf16.msra.mxu1 %v2543_v37  ;;  %v2635_v11 = vor.u32 %v3396_v3, %v2632_v4  ;;  %v3394_v12 = vld [vmem:[#allocation2 + $0x194] sm:$0xf0]  ;;  %v3360_v13 = vld [vmem:[#allocation2 + $0x8c] sm:$0xf]  ;;  %v2488_v14 = vld [vmem:[#allocation2 + $0x98] sm:$0xf0]  ;;  %v2487_v17 = vor.u32 %v3362_v9, %v2486_v8 }
  0x3c   : > { %833 = vmatpush.bf16.msra.mxu2 %v2419_v38  ;;  %v3392_v15 = vld [vmem:[#allocation2 + $0x18c] sm:$0xf]  ;;  %v2616_v16 = vld [vmem:[#allocation2 + $0x198] sm:$0xf0]  ;;  %v2615_v18 = vor.u32 %v3394_v12, %v2614_v10  ;;  %v2491_v19 = vor.u32 %v3360_v13, %v2488_v14  ;;  %v2470_v20 = vld [vmem:[#allocation2 + $0x68] sm:$0xf] }
  0x3d   : > { %846 = vmatpush.bf16.msra.mxu3 %v2547_v42  ;;  %808 = vmatmul.bf16.vlgmr.msra.gmra.mxu0 %v3897_v50  ;;  %v3358_v21 = vld [vmem:[#allocation2 + $0x74] sm:$0xf0]  ;;  %v2598_v22 = vld [vmem:[#allocation2 + $0x168] sm:$0xf]  ;;  %v2619_v23 = vor.u32 %v3392_v15, %v2616_v16  ;;  %v3356_v25 = vld [vmem:[#allocation2 + $0x6c] sm:$0xf] }
  0x3e   : > { %852 = vmatpush.bf16.msrb.mxu0 %v2535_v43  ;;  %821 = vmatmul.bf16.vlgmr.msra.gmra.mxu1 %v3899_v54  ;;  %v3390_v24 = vld [vmem:[#allocation2 + $0x174] sm:$0xf0]  ;;  %v2472_v26 = vld [vmem:[#allocation2 + $0x78] sm:$0xf0]  ;;  %v3388_v27 = vld [vmem:[#allocation2 + $0x16c] sm:$0xf]  ;;  %v2471_v29 = vor.u32 %v3358_v21, %v2470_v20 }
  0x3f   : > { %865 = vmatpush.bf16.msrb.mxu1 %v2663_v44  ;;  %834 = vmatmul.bf16.vlgmr.msra.gmra.mxu2 %v3897_v50  ;;  %v2600_v28 = vld [vmem:[#allocation2 + $0x178] sm:$0xf0]  ;;  %v2599_v30 = vor.u32 %v3390_v24, %v2598_v22  ;;  %v2475_v31 = vor.u32 %v3356_v25, %v2472_v26  ;;  %v2454_v32 = vld [vmem:[#allocation2 + $0x48] sm:$0xf]  ;;  %v3354_v33 = vld [vmem:[#allocation2 + $0x54] sm:$0xf0] }
  0x40   : > { %878 = vmatpush.bf16.msrb.mxu2 %v2539_v45  ;;  %847 = vmatmul.bf16.vlgmr.msra.gmra.mxu3 %v3899_v54  ;;  %v2582_v34 = vld [vmem:[#allocation2 + $0x148] sm:$0xf]  ;;  %v2603_v35 = vor.u32 %v3388_v27, %v2600_v28  ;;  %v3386_v36 = vld [vmem:[#allocation2 + $0x154] sm:$0xf0]  ;;  %v3352_v37 = vld [vmem:[#allocation2 + $0x4c] sm:$0xf]  ;;  %v2455_v41 = vor.u32 %v3354_v33, %v2454_v32 }
  0x41   : > { %891 = vmatpush.bf16.msrb.mxu3 %v2667_v49  ;;  %v2456_v38 = vld [vmem:[#allocation2 + $0x58] sm:$0xf0]  ;;  %v3384_v39 = vld [vmem:[#allocation2 + $0x14c] sm:$0xf]  ;;  %v2438_v42 = vld [vmem:[#allocation2 + $0x28] sm:$0xf]  ;;  %v2583_v43 = vor.u32 %v3386_v36, %v2582_v34 }
  0x42   : > { %853 = vmatpush.bf16.msrb.mxu0 %v2519_v57  ;;  %v2584_v40 = vld [vmem:[#allocation2 + $0x158] sm:$0xf0]  ;;  %v2459_v44 = vor.u32 %v3352_v37, %v2456_v38  ;;  %v3350_v45 = vld [vmem:[#allocation2 + $0x34] sm:$0xf0]  ;;  %v2566_v46 = vld [vmem:[#allocation2 + $0x128] sm:$0xf] }
  0x43   : > { %866 = vmatpush.bf16.msrb.mxu1 %v2647_v58  ;;  %v2587_v47 = vor.u32 %v3384_v39, %v2584_v40  ;;  %v3382_v48 = vld [vmem:[#allocation2 + $0x134] sm:$0xf0]  ;;  %v3348_v49 = vld [vmem:[#allocation2 + $0x2c] sm:$0xf]  ;;  %v2440_v51 = vld [vmem:[#allocation2 + $0x38] sm:$0xf0]  ;;  %v2439_v55 = vor.u32 %v3350_v45, %v2438_v42 }
  0x44   : > { %879 = vmatpush.bf16.msrb.mxu2 %v2523_v59  ;;  %v3380_v52 = vld [vmem:[#allocation2 + $0x12c] sm:$0xf]  ;;  %v2568_v53 = vld [vmem:[#allocation2 + $0x138] sm:$0xf0]  ;;  %v2422_v56 = vld [vmem:[#allocation2 + $0x8] sm:$0xf]  ;;  %v2567_v57 = vor.u32 %v3382_v48, %v2566_v46  ;;  %v2443_v58 = vor.u32 %v3348_v49, %v2440_v51 }
  0x45   : > { %892 = vmatpush.bf16.msrb.mxu3 %v2651_v63  ;;  %v3346_v59 = vld [vmem:[#allocation2 + $0x14] sm:$0xf0]  ;;  %v2550_v60 = vld [vmem:[#allocation2 + $0x108] sm:$0xf]  ;;  %v2571_v62 = vor.u32 %v3380_v52, %v2568_v53  ;;  %v3344_v63 = vld [vmem:[#allocation2 + $0xc] sm:$0xf] }
  0x46   : > { %854 = vmatpush.bf16.msrb.mxu0 %v2503_v5  ;;  %v3378_v61 = vld [vmem:[#allocation2 + $0x114] sm:$0xf0]  ;;  %v2424_v0 = vld [vmem:[#allocation2 + $0x18] sm:$0xf0]  ;;  %v3376_v1 = vld [vmem:[#allocation2 + $0x10c] sm:$0xf]  ;;  %v2423_v5 = vor.u32 %v3346_v59, %v2422_v56 }
  0x47   : > { %867 = vmatpush.bf16.msrb.mxu1 %v2631_v6  ;;  %v2552_v2 = vld [vmem:[#allocation2 + $0x118] sm:$0xf0]  ;;  %v2782_v3 = vld [vmem:[#allocation4 + $0xe0] sm:$0xf]  ;;  %v3437_v4 = vld [vmem:[#allocation4 + $0xec] sm:$0xf0]  ;;  %v2551_v8 = vor.u32 %v3378_v61, %v2550_v60  ;;  %v2427_v9 = vor.u32 %v3344_v63, %v2424_v0 }
  0x48   : > { %880 = vmatpush.bf16.msrb.mxu2 %v2507_v7  ;;  %v2910_v6 = vld [vmem:[#allocation4 + $0x1e0] sm:$0xf]  ;;  %v3469_v7 = vld [vmem:[#allocation4 + $0x1ec] sm:$0xf0]  ;;  %v2555_v10 = vor.u32 %v3376_v1, %v2552_v2 }
  0x49   : > { %893 = vmatpush.bf16.msrb.mxu3 %v2635_v11  ;;  %v2783_v11 = vor.u32 %v3437_v4, %v2782_v3  ;;  %v3038_v12 = vld [vmem:[#allocation4 + $0x2e0] sm:$0xf]  ;;  %v3501_v13 = vld [vmem:[#allocation4 + $0x2ec] sm:$0xf0]  ;;  %v2911_v16 = vor.u32 %v3469_v7, %v2910_v6 }
  0x4a   : > { %855 = vmatpush.bf16.msrb.mxu0 %v2487_v17  ;;  %v2766_v14 = vld [vmem:[#allocation4 + $0xc0] sm:$0xf]  ;;  %v3433_v15 = vld [vmem:[#allocation4 + $0xcc] sm:$0xf0] }
  0x4b   : > { %868 = vmatpush.bf16.msrb.mxu1 %v2615_v18  ;;  %v2894_v17 = vld [vmem:[#allocation4 + $0x1c0] sm:$0xf]  ;;  %v3465_v18 = vld [vmem:[#allocation4 + $0x1cc] sm:$0xf0]  ;;  %v2767_v20 = vor.u32 %v3433_v15, %v2766_v14  ;;  %v2784_v15 = vld [vmem:[#allocation4 + $0xf0] sm:$0xf0] }
  0x4c   : > { %881 = vmatpush.bf16.msrb.mxu2 %v2491_v19  ;;  %v3039_v19 = vor.u32 %v3501_v13, %v3038_v12  ;;  %v3022_v21 = vld [vmem:[#allocation4 + $0x2c0] sm:$0xf]  ;;  %v3497_v22 = vld [vmem:[#allocation4 + $0x2cc] sm:$0xf0]  ;;  %v2895_v25 = vor.u32 %v3465_v18, %v2894_v17  ;;  %v3435_v13 = vld [vmem:[#allocation4 + $0xe4] sm:$0xf] }
  0x4d   : > { %894 = vmatpush.bf16.msrb.mxu3 %v2619_v23  ;;  %v2750_v23 = vld [vmem:[#allocation4 + $0xa0] sm:$0xf]  ;;  %v3429_v24 = vld [vmem:[#allocation4 + $0xac] sm:$0xf0]  ;;  %v3467_v18 = vld [vmem:[#allocation4 + $0x1e4] sm:$0xf] }
  0x4e   : > { %856 = vmatpush.bf16.msrb.mxu0 %v2471_v29  ;;  %v3166_v26 = vld [vmem:[#allocation4 + $0x3e0] sm:$0xf]  ;;  %v3461_v28 = vld [vmem:[#allocation4 + $0x1ac] sm:$0xf0]  ;;  %v2751_v32 = vor.u32 %v3429_v24, %v2750_v23  ;;  %v3431_v23 = vld [vmem:[#allocation4 + $0xc4] sm:$0xf] }
  0x4f   : > { %869 = vmatpush.bf16.msrb.mxu1 %v2599_v30  ;;  %v2878_v27 = vld [vmem:[#allocation4 + $0x1a0] sm:$0xf]  ;;  %v3533_v29 = vld [vmem:[#allocation4 + $0x3ec] sm:$0xf0]  ;;  %v3023_v30 = vor.u32 %v3497_v22, %v3022_v21  ;;  %v2787_v21 = vor.u32 %v3435_v13, %v2784_v15  ;;  %v2768_v24 = vld [vmem:[#allocation4 + $0xd0] sm:$0xf0] }
  0x50   : > { %882 = vmatpush.bf16.msrb.mxu2 %v2475_v31  ;;  %v3167_v31 = vor.u32 %v3533_v29, %v3166_v26  ;;  %v2734_v33 = vld [vmem:[#allocation4 + $0x80] sm:$0xf]  ;;  %v3425_v36 = vld [vmem:[#allocation4 + $0x8c] sm:$0xf0]  ;;  %v2879_v37 = vor.u32 %v3461_v28, %v2878_v27  ;;  %v3463_v26 = vld [vmem:[#allocation4 + $0x1c4] sm:$0xf]  ;;  %v2771_v28 = vor.u32 %v3431_v23, %v2768_v24 }
  0x51   : > { %895 = vmatpush.bf16.msrb.mxu3 %v2603_v35  ;;  %v3006_v34 = vld [vmem:[#allocation4 + $0x2a0] sm:$0xf]  ;;  %v3493_v35 = vld [vmem:[#allocation4 + $0x2ac] sm:$0xf0]  ;;  %v2896_v27 = vld [vmem:[#allocation4 + $0x1d0] sm:$0xf0] }
  0x52   : > { %857 = vmatpush.bf16.msrb.mxu0 %v2455_v41  ;;  %v3150_v38 = vld [vmem:[#allocation4 + $0x3c0] sm:$0xf]  ;;  %v3529_v39 = vld [vmem:[#allocation4 + $0x3cc] sm:$0xf0]  ;;  %v3007_v42 = vor.u32 %v3493_v35, %v3006_v34  ;;  %v3427_v29 = vld [vmem:[#allocation4 + $0xa4] sm:$0xf] }
  0x53   : > { %870 = vmatpush.bf16.msrb.mxu1 %v2583_v43  ;;  %v3457_v40 = vld [vmem:[#allocation4 + $0x18c] sm:$0xf0]  ;;  %v3151_v41 = vor.u32 %v3529_v39, %v3150_v38  ;;  %v2718_v43 = vld [vmem:[#allocation4 + $0x60] sm:$0xf]  ;;  %v3423_v35 = vld [vmem:[#allocation4 + $0x84] sm:$0xf] }
  0x54   : > { %883 = vmatpush.bf16.msrb.mxu2 %v2459_v44  ;;  %v2990_v44 = vld [vmem:[#allocation4 + $0x280] sm:$0xf]  ;;  %v3489_v45 = vld [vmem:[#allocation4 + $0x28c] sm:$0xf0]  ;;  %v3455_v38 = vld [vmem:[#allocation4 + $0x184] sm:$0xf] }
  0x55   : > { %896 = vmatpush.bf16.msrb.mxu3 %v2587_v47  ;;  %v3421_v46 = vld [vmem:[#allocation4 + $0x6c] sm:$0xf0]  ;;  %v3134_v48 = vld [vmem:[#allocation4 + $0x3a0] sm:$0xf]  ;;  %v2864_v39 = vld [vmem:[#allocation4 + $0x190] sm:$0xf0] }
  0x56   : > { %858 = vmatpush.bf16.msrb.mxu0 %v2439_v55  ;;  %v3525_v49 = vld [vmem:[#allocation4 + $0x3ac] sm:$0xf0]  ;;  %v2846_v51 = vld [vmem:[#allocation4 + $0x160] sm:$0xf]  ;;  %v2991_v55 = vor.u32 %v3489_v45, %v2990_v44  ;;  %v2719_v56 = vor.u32 %v3421_v46, %v2718_v43  ;;  %v3415_v45 = vld [vmem:[#allocation4 + $0x44] sm:$0xf] }
  0x57   : > { %871 = vmatpush.bf16.msrb.mxu1 %v2567_v57  ;;  %v3453_v52 = vld [vmem:[#allocation4 + $0x16c] sm:$0xf0]  ;;  %v3135_v53 = vor.u32 %v3525_v49, %v3134_v48  ;;  %v2702_v57 = vld [vmem:[#allocation4 + $0x40] sm:$0xf] }
  0x58   : > { %884 = vmatpush.bf16.msrb.mxu2 %v2443_v58  ;;  %v2974_v58 = vld [vmem:[#allocation4 + $0x260] sm:$0xf]  ;;  %v3485_v59 = vld [vmem:[#allocation4 + $0x26c] sm:$0xf0]  ;;  %v2847_v61 = vor.u32 %v3453_v52, %v2846_v51  ;;  %v3451_v52 = vld [vmem:[#allocation4 + $0x164] sm:$0xf] }
  0x59   : > { %897 = vmatpush.bf16.msrb.mxu3 %v2571_v62  ;;  %v3417_v60 = vld [vmem:[#allocation4 + $0x4c] sm:$0xf0]  ;;  %v3118_v62 = vld [vmem:[#allocation4 + $0x380] sm:$0xf]  ;;  %v2975_v3 = vor.u32 %v3485_v59, %v2974_v58  ;;  %v3411_v59 = vld [vmem:[#allocation4 + $0x24] sm:$0xf] }
  0x5a   : > { %859 = vmatpush.bf16.msrb.mxu0 %v2423_v5  ;;  %v3521_v63 = vld [vmem:[#allocation4 + $0x38c] sm:$0xf0]  ;;  %v2830_v0 = vld [vmem:[#allocation4 + $0x140] sm:$0xf]  ;;  %v2703_v4 = vor.u32 %v3417_v60, %v2702_v57 }
  0x5b   : > { %872 = vmatpush.bf16.msrb.mxu1 %v2551_v8  ;;  %v3449_v1 = vld [vmem:[#allocation4 + $0x14c] sm:$0xf0]  ;;  %v3119_v2 = vor.u32 %v3521_v63, %v3118_v62  ;;  %v2686_v5 = vld [vmem:[#allocation4 + $0x20] sm:$0xf] }
  0x5c   : > { %885 = vmatpush.bf16.msrb.mxu2 %v2427_v9  ;;  %v3413_v6 = vld [vmem:[#allocation4 + $0x2c] sm:$0xf0]  ;;  %v2831_v7 = vor.u32 %v3449_v1, %v2830_v0  ;;  %v2814_v8 = vld [vmem:[#allocation4 + $0x120] sm:$0xf]  ;;  %v3447_v1 = vld [vmem:[#allocation4 + $0x144] sm:$0xf] }
  0x5d   : > { %898 = vmatpush.bf16.msrb.mxu3 %v2555_v10  ;;  %860 = vmatmul.bf16.vlgmr.msrb.gmra.mxu0 %v3897_v50  ;;  %v3445_v9 = vld [vmem:[#allocation4 + $0x12c] sm:$0xf0]  ;;  %v2687_v10 = vor.u32 %v3413_v6, %v2686_v5  ;;  %v2958_v43 = vld [vmem:[#allocation4 + $0x240] sm:$0xf] }
  0x5e   : > { %1690 = vmatpush.bf16.msra.mxu0 %v2783_v11  ;;  %873 = vmatmul.bf16.vlgmr.msrb.gmra.mxu1 %v3899_v54  ;;  %v2670_v11 = vld [vmem:[#allocation4] sm:$0xf]  ;;  %v3409_v12 = vld [vmem:[#allocation4 + $0xc] sm:$0xf0]  ;;  %v2815_v14 = vor.u32 %v3445_v9, %v2814_v8  ;;  %v3407_v8 = vld [vmem:[#allocation4 + $0x4] sm:$0xf] }
  0x5f   : > { %1703 = vmatpush.bf16.msra.mxu1 %v2911_v16  ;;  %886 = vmatmul.bf16.vlgmr.msrb.gmra.mxu2 %v3897_v50  ;;  %v2862_v50 = vld [vmem:[#allocation4 + $0x180] sm:$0xf]  ;;  %v3441_v17 = vld [vmem:[#allocation4 + $0x10c] sm:$0xf0]  ;;  %v2672_v9 = vld [vmem:[#allocation4 + $0x10] sm:$0xf0] }
  0x60   : > { %899 = vmatmul.bf16.vlgmr.msrb.gmra.mxu3 %v3899_v54  ;;  %1716 = vmatpush.bf16.msra.mxu2 %v3039_v19  ;;  %v2735_v54 = vor.u32 %v3425_v36, %v2734_v33  ;;  %v2863_v47 = vor.u32 %v3457_v40, %v2862_v50  ;;  %v2798_v16 = vld [vmem:[#allocation4 + $0x100] sm:$0xf]  ;;  %v2912_v19 = vld [vmem:[#allocation4 + $0x1f0] sm:$0xf0]  ;;  %v3419_v40 = vld [vmem:[#allocation4 + $0x64] sm:$0xf] }
  0x61   : > { %1729 = vmatpush.bf16.msra.mxu3 %v3167_v31  ;;  %v2799_v22 = vor.u32 %v3441_v17, %v2798_v16  ;;  %v2899_v31 = vor.u32 %v3463_v26, %v2896_v27  ;;  %v2880_v33 = vld [vmem:[#allocation4 + $0x1b0] sm:$0xf0]  ;;  %v3481_v44 = vld [vmem:[#allocation4 + $0x24c] sm:$0xf0]  ;;  %v3102_v49 = vld [vmem:[#allocation4 + $0x360] sm:$0xf] }
  0x62   : > { %1691 = vmatpush.bf16.msra.mxu0 %v2767_v20  ;;  %v2671_v20 = vor.u32 %v3409_v12, %v2670_v11  ;;  %v2736_v36 = vld [vmem:[#allocation4 + $0x90] sm:$0xf0]  ;;  %v2959_v46 = vor.u32 %v3481_v44, %v2958_v43  ;;  %v3517_v51 = vld [vmem:[#allocation4 + $0x36c] sm:$0xf0]  ;;  %v2942_v57 = vld [vmem:[#allocation4 + $0x220] sm:$0xf]  ;;  %v2675_v11 = vor.u32 %v3407_v8, %v2672_v9 }
  0x63   : > { %1704 = vmatpush.bf16.msra.mxu1 %v2895_v25  ;;  %v2915_v25 = vor.u32 %v3467_v18, %v2912_v19  ;;  %v2739_v50 = vor.u32 %v3423_v35, %v2736_v36  ;;  %v3477_v58 = vld [vmem:[#allocation4 + $0x22c] sm:$0xf0]  ;;  %v3086_v63 = vld [vmem:[#allocation4 + $0x340] sm:$0xf]  ;;  %v3040_v12 = vld [vmem:[#allocation4 + $0x2f0] sm:$0xf0] }
  0x64   : > { %1717 = vmatpush.bf16.msra.mxu2 %v3023_v30  ;;  %v2752_v30 = vld [vmem:[#allocation4 + $0xb0] sm:$0xf0]  ;;  %v2943_v60 = vor.u32 %v3477_v58, %v2942_v57  ;;  %v3513_v0 = vld [vmem:[#allocation4 + $0x34c] sm:$0xf0]  ;;  %v2926_v5 = vld [vmem:[#allocation4 + $0x200] sm:$0xf] }
  0x65   : > { %1730 = vmatpush.bf16.msra.mxu3 %v3151_v41  ;;  %v2755_v34 = vor.u32 %v3427_v29, %v2752_v30  ;;  %v2720_v41 = vld [vmem:[#allocation4 + $0x70] sm:$0xf0]  ;;  %v3473_v6 = vld [vmem:[#allocation4 + $0x20c] sm:$0xf0]  ;;  %v3443_v16 = vld [vmem:[#allocation4 + $0x124] sm:$0xf] }
  0x66   : > { %1692 = vmatpush.bf16.msra.mxu0 %v2751_v32  ;;  %v3459_v32 = vld [vmem:[#allocation4 + $0x1a4] sm:$0xf]  ;;  %v3509_v15 = vld [vmem:[#allocation4 + $0x32c] sm:$0xf0]  ;;  %v2816_v18 = vld [vmem:[#allocation4 + $0x130] sm:$0xf0] }
  0x67   : > { %1705 = vmatpush.bf16.msra.mxu1 %v2879_v37  ;;  %v2883_v37 = vor.u32 %v3459_v32, %v2880_v33  ;;  %v2819_v19 = vor.u32 %v3443_v16, %v2816_v18  ;;  %v3054_v23 = vld [vmem:[#allocation4 + $0x300] sm:$0xf]  ;;  %v3505_v24 = vld [vmem:[#allocation4 + $0x30c] sm:$0xf0]  ;;  %v3439_v26 = vld [vmem:[#allocation4 + $0x104] sm:$0xf] }
  0x68   : > { %1718 = vmatpush.bf16.msra.mxu2 %v3007_v42  ;;  %v2867_v42 = vor.u32 %v3455_v38, %v2864_v39  ;;  %v2800_v27 = vld [vmem:[#allocation4 + $0x110] sm:$0xf0]  ;;  %v3491_v32 = vld [vmem:[#allocation4 + $0x2a4] sm:$0xf] }
  0x69   : > { %1731 = vmatpush.bf16.msra.mxu3 %v3135_v53  ;;  %v3103_v53 = vor.u32 %v3517_v51, %v3102_v49  ;;  %v2803_v29 = vor.u32 %v3439_v26, %v2800_v27  ;;  %v3168_v30 = vld [vmem:[#allocation4 + $0x3f0] sm:$0xf0]  ;;  %v3527_v35 = vld [vmem:[#allocation4 + $0x3c4] sm:$0xf]  ;;  %v3470_v26 = vld [vmem:[#allocation4 + $0x1f4] sm:$0xf0] }
  0x6a   : > { %1693 = vmatpush.bf16.msra.mxu0 %v2735_v54  ;;  %v2723_v54 = vor.u32 %v3419_v40, %v2720_v41  ;;  %v3008_v33 = vld [vmem:[#allocation4 + $0x2b0] sm:$0xf0]  ;;  %v3487_v38 = vld [vmem:[#allocation4 + $0x284] sm:$0xf] }
  0x6b   : > { %1706 = vmatpush.bf16.msra.mxu1 %v2863_v47  ;;  %v2704_v47 = vld [vmem:[#allocation4 + $0x50] sm:$0xf0]  ;;  %v3523_v40 = vld [vmem:[#allocation4 + $0x3a4] sm:$0xf] }
  0x6c   : > { %1719 = vmatpush.bf16.msra.mxu2 %v2991_v55  ;;  %v2707_v48 = vor.u32 %v3415_v45, %v2704_v47  ;;  %v2848_v55 = vld [vmem:[#allocation4 + $0x170] sm:$0xf0]  ;;  %v3912_v45 = vld [vmem:[%s3967_s2] sm:$0xf]  ;;  %v3479_v49 = vld [vmem:[#allocation4 + $0x244] sm:$0xf] }
  0x6d   : > { %1732 = vmatpush.bf16.msra.mxu3 %v3119_v2  ;;  %v3087_v2 = vor.u32 %v3513_v0, %v3086_v63  ;;  %v3152_v36 = vld [vmem:[#allocation4 + $0x3d0] sm:$0xf0]  ;;  %v3511_v0 = vld [vmem:[#allocation4 + $0x344] sm:$0xf] }
  0x6e   : > { %1694 = vmatpush.bf16.msra.mxu0 %v2719_v56  ;;  %v2851_v56 = vor.u32 %v3451_v52, %v2848_v55  ;;  %v2992_v39 = vld [vmem:[#allocation4 + $0x290] sm:$0xf0]  ;;  %v465_v52 = vperm.slane %v3912_v45, 0  ;;  %v3515_v55 = vld [vmem:[#allocation4 + $0x364] sm:$0xf] }
  0x6f   : > { %1707 = vmatpush.bf16.msra.mxu1 %v2847_v61  ;;  %v2688_v61 = vld [vmem:[#allocation4 + $0x30] sm:$0xf0]  ;;  %v3507_v16 = vld [vmem:[#allocation4 + $0x324] sm:$0xf] }
  0x70   : > { %1720 = vmatpush.bf16.msra.mxu2 %v2975_v3  ;;  %v2691_v62 = vor.u32 %v3411_v59, %v2688_v61  ;;  %v2832_v3 = vld [vmem:[#allocation4 + $0x150] sm:$0xf0]  ;;  %v3475_v59 = vld [vmem:[#allocation4 + $0x224] sm:$0xf] }
  0x71   : > { %1733 = vmatpush.bf16.msra.mxu3 %v3103_v53  ;;  %v3136_v41 = vld [vmem:[#allocation4 + $0x3b0] sm:$0xf0]  ;;  %v3503_v27 = vld [vmem:[#allocation4 + $0x304] sm:$0xf] }
  0x72   : > { %1695 = vmatpush.bf16.msra.mxu0 %v2703_v4  ;;  %v2835_v4 = vor.u32 %v3447_v1, %v2832_v3  ;;  %v2976_v43 = vld [vmem:[#allocation4 + $0x270] sm:$0xf0]  ;;  %v2790_v3 = vld [vmem:[#allocation4 + $0xe8] sm:$0xf] }
  0x73   : > { %1708 = vmatpush.bf16.msra.mxu1 %v2831_v7  ;;  %v2927_v7 = vor.u32 %v3473_v6, %v2926_v5  ;;  %v3120_v47 = vld [vmem:[#allocation4 + $0x390] sm:$0xf0]  ;;  %v466_v6 = vperm.slane %v3912_v45, 1 }
  0x74   : > { %1721 = vmatpush.bf16.msra.mxu2 %v2959_v46  ;;  %v3519_v46 = vld [vmem:[#allocation4 + $0x384] sm:$0xf]  ;;  %v2960_v51 = vld [vmem:[#allocation4 + $0x250] sm:$0xf0] }
  0x75   : > { %1734 = vmatpush.bf16.msra.mxu3 %v3087_v2  ;;  %v2963_v53 = vor.u32 %v3479_v49, %v2960_v51  ;;  %v3088_v1 = vld [vmem:[#allocation4 + $0x350] sm:$0xf0]  ;;  %v2870_v49 = vld [vmem:[#allocation4 + $0x188] sm:$0xf]  ;;  %v3458_v51 = vld [vmem:[#allocation4 + $0x194] sm:$0xf0] }
  0x76   : > { %1696 = vmatpush.bf16.msra.mxu0 %v2687_v10  ;;  %v3499_v10 = vld [vmem:[#allocation4 + $0x2e4] sm:$0xf]  ;;  %v3091_v5 = vor.u32 %v3511_v0, %v3088_v1  ;;  %v2928_v8 = vld [vmem:[#allocation4 + $0x210] sm:$0xf0] }
  0x77   : > { %1709 = vmatpush.bf16.msra.mxu1 %v2815_v14  ;;  %v3043_v13 = vor.u32 %v3499_v10, %v3040_v12  ;;  %v3070_v14 = vld [vmem:[#allocation4 + $0x320] sm:$0xf]  ;;  %v2774_v12 = vld [vmem:[#allocation4 + $0xc8] sm:$0xf] }
  0x78   : > { %1722 = vmatpush.bf16.msra.mxu2 %v2943_v60  ;;  %v3071_v17 = vor.u32 %v3509_v15, %v3070_v14  ;;  %v2944_v60 = vld [vmem:[#allocation4 + $0x230] sm:$0xf0]  ;;  %v3434_v15 = vld [vmem:[#allocation4 + $0xd4] sm:$0xf0] }
  0x79   : > { %v2947_v63 = vor.u32 %v3475_v59, %v2944_v60  ;;  %v3454_v59 = vld [vmem:[#allocation4 + $0x174] sm:$0xf0]  ;;  %v2694_v60 = vld [vmem:[#allocation4 + $0x28] sm:$0xf] }
  0x7a   : > { %1697 = vmatpush.bf16.msra.mxu0 %v2671_v20  ;;  %v3495_v20 = vld [vmem:[#allocation4 + $0x2c4] sm:$0xf]  ;;  %1735 = vmatpush.bf16.msra.mxu3 %v3071_v17  ;;  %v3072_v17 = vld [vmem:[#allocation4 + $0x330] sm:$0xf0] }
  0x7b   : > { %1710 = vmatpush.bf16.msra.mxu1 %v2799_v22 }
  0x7c   : > { %1723 = vmatpush.bf16.msra.mxu2 %v2927_v7  ;;  %v3471_v7 = vld [vmem:[#allocation4 + $0x204] sm:$0xf] }
  0x7d   : > { %v2931_v10 = vor.u32 %v3471_v7, %v2928_v8  ;;  %v3046_v7 = vld [vmem:[#allocation4 + $0x2e8] sm:$0xf] }
  0x7e   : > { %1742 = vmatpush.bf16.msrb.mxu0 %v2787_v21  ;;  %v3024_v21 = vld [vmem:[#allocation4 + $0x2d0] sm:$0xf0] }
  0x7f   : > { %1755 = vmatpush.bf16.msrb.mxu1 %v2915_v25  ;;  %v3027_v22 = vor.u32 %v3495_v20, %v3024_v21  ;;  %v3055_v25 = vor.u32 %v3505_v24, %v3054_v23  ;;  %v3075_v21 = vor.u32 %v3507_v16, %v3072_v17  ;;  %v2822_v17 = vld [vmem:[#allocation4 + $0x128] sm:$0xf] }
  0x80   : > { %1768 = vmatpush.bf16.msrb.mxu2 %v3043_v13 }
  0x81   : > { %1736 = vmatpush.bf16.msra.mxu3 %v3055_v25  ;;  %v2775_v25 = vor.u32 %v3434_v15, %v2774_v12  ;;  %v468_v12 = vperm.slane %v3912_v45, 3 }
  0x82   : > { %1743 = vmatpush.bf16.msrb.mxu0 %v2771_v28  ;;  %v3531_v28 = vld [vmem:[#allocation4 + $0x3e4] sm:$0xf] }
  0x83   : > { %1756 = vmatpush.bf16.msrb.mxu1 %v2899_v31  ;;  %v3171_v31 = vor.u32 %v3531_v28, %v3168_v30  ;;  %v3056_v28 = vld [vmem:[#allocation4 + $0x310] sm:$0xf0]  ;;  %v3430_v30 = vld [vmem:[#allocation4 + $0xb4] sm:$0xf0] }
  0x84   : > { %1769 = vmatpush.bf16.msrb.mxu2 %v3027_v22  ;;  %v2918_v22 = vld [vmem:[#allocation4 + $0x1e8] sm:$0xf] }
  0x85   : > { %1781 = vmatpush.bf16.msrb.mxu3 %v3171_v31  ;;  %v3059_v31 = vor.u32 %v3503_v27, %v3056_v28 }
  0x86   : > { %1744 = vmatpush.bf16.msrb.mxu0 %v2755_v34  ;;  %v3011_v34 = vor.u32 %v3491_v32, %v3008_v33  ;;  %v2919_v33 = vor.u32 %v3470_v26, %v2918_v22  ;;  %v2776_v26 = vld [vmem:[#allocation4 + $0xd8] sm:$0xf0] }
  0x87   : > { %1757 = vmatpush.bf16.msrb.mxu1 %v2883_v37  ;;  %v3155_v37 = vor.u32 %v3527_v35, %v3152_v36  ;;  %v2902_v36 = vld [vmem:[#allocation4 + $0x1c8] sm:$0xf] }
  0x88   : > { %1770 = vmatpush.bf16.msrb.mxu2 %v3011_v34 }
  0x89   : > { %1782 = vmatpush.bf16.msrb.mxu3 %v3155_v37  ;;  %v3466_v37 = vld [vmem:[#allocation4 + $0x1d4] sm:$0xf0] }
  0x8a   : > { %1745 = vmatpush.bf16.msrb.mxu0 %v2739_v50  ;;  %v2995_v50 = vor.u32 %v3487_v38, %v2992_v39  ;;  %v2742_v39 = vld [vmem:[#allocation4 + $0x88] sm:$0xf] }
  0x8b   : > { %1758 = vmatpush.bf16.msrb.mxu1 %v2867_v42  ;;  %v3139_v42 = vor.u32 %v3523_v40, %v3136_v41  ;;  %v2903_v41 = vor.u32 %v3466_v37, %v2902_v36 }
  0x8c   : > { %1771 = vmatpush.bf16.msrb.mxu2 %v2995_v50  ;;  %v3426_v50 = vld [vmem:[#allocation4 + $0x94] sm:$0xf0] }
  0x8d   : > { %1783 = vmatpush.bf16.msrb.mxu3 %v3139_v42  ;;  %v2743_v42 = vor.u32 %v3426_v50, %v2742_v39  ;;  %v3468_v39 = vld [vmem:[#allocation4 + $0x1ec] sm:$0xf]  ;;  %v2920_v50 = vld [vmem:[#allocation4 + $0x1f8] sm:$0xf0] }
  0x8e   : > { %1746 = vmatpush.bf16.msrb.mxu0 %v2723_v54  ;;  %v3483_v54 = vld [vmem:[#allocation4 + $0x264] sm:$0xf] }
  0x8f   : > { %1759 = vmatpush.bf16.msrb.mxu1 %v2851_v56  ;;  %v2979_v44 = vor.u32 %v3483_v54, %v2976_v43  ;;  %v3104_v56 = vld [vmem:[#allocation4 + $0x370] sm:$0xf0]  ;;  %v2886_v54 = vld [vmem:[#allocation4 + $0x1a8] sm:$0xf]  ;;  %v3462_v43 = vld [vmem:[#allocation4 + $0x1b4] sm:$0xf0] }
  0x90   : > { %v3107_v57 = vor.u32 %v3515_v55, %v3104_v56  ;;  %v2871_v55 = vor.u32 %v3458_v51, %v2870_v49  ;;  %v467_v56 = vperm.slane %v3912_v45, 2  ;;  %v3530_v49 = vld [vmem:[#allocation4 + $0x3d4] sm:$0xf0] }
  0x91   : > { %1772 = vmatpush.bf16.msrb.mxu2 %v2979_v44  ;;  %v2726_v44 = vld [vmem:[#allocation4 + $0x68] sm:$0xf] }
  0x92   : > { %1747 = vmatpush.bf16.msrb.mxu0 %v2707_v48  ;;  %v3123_v48 = vor.u32 %v3519_v46, %v3120_v47  ;;  %v3422_v46 = vld [vmem:[#allocation4 + $0x74] sm:$0xf0]  ;;  %v2887_v47 = vor.u32 %v3462_v43, %v2886_v54  ;;  %v2760_v54 = vld [vmem:[#allocation4 + $0xb8] sm:$0xf0] }
  0x93   : > { %1760 = vmatpush.bf16.msrb.mxu1 %v2835_v4  ;;  %v3438_v4 = vld [vmem:[#allocation4 + $0xf4] sm:$0xf0] }
  0x94   : > { %1784 = vmatpush.bf16.msrb.mxu3 %v3123_v48  ;;  %v2727_v48 = vor.u32 %v3422_v46, %v2726_v44 }
  0x95   : > { %1773 = vmatpush.bf16.msrb.mxu2 %v2963_v53  ;;  %v3418_v53 = vld [vmem:[#allocation4 + $0x54] sm:$0xf0] }
  0x96   : > { %1748 = vmatpush.bf16.msrb.mxu0 %v2691_v62 }
  0x97   : > { %1761 = vmatpush.bf16.msrb.mxu1 %v2819_v19 }
  0x98   : > { %1785 = vmatpush.bf16.msrb.mxu3 %v3107_v57 }
  0x99   : > { %1774 = vmatpush.bf16.msrb.mxu2 %v2947_v63 }
  0x9a   : > { %1749 = vmatpush.bf16.msrb.mxu0 %v2675_v11  ;;  %v2791_v11 = vor.u32 %v3438_v4, %v2790_v3  ;;  %v2838_v3 = vld [vmem:[#allocation4 + $0x148] sm:$0xf]  ;;  %v3450_v4 = vld [vmem:[#allocation4 + $0x154] sm:$0xf0] }
  0x9b   : > { %1762 = vmatpush.bf16.msrb.mxu1 %v2803_v29  ;;  %v2758_v29 = vld [vmem:[#allocation4 + $0xa8] sm:$0xf] }
  0x9c   : > { %1786 = vmatpush.bf16.msrb.mxu3 %v3091_v5  ;;  %v2759_v35 = vor.u32 %v3430_v30, %v2758_v29  ;;  %v2678_v5 = vld [vmem:[#allocation4 + $0x8] sm:$0xf] }
  0x9d   : > { %1775 = vmatpush.bf16.msrb.mxu2 %v2931_v10  ;;  %v3436_v10 = vld [vmem:[#allocation4 + $0xec] sm:$0xf]  ;;  %v2806_v30 = vld [vmem:[#allocation4 + $0x108] sm:$0xf] }
  0xa0   : > { %1787 = vmatpush.bf16.msrb.mxu3 %v3075_v21  ;;  %v3030_v21 = vld [vmem:[#allocation4 + $0x2c8] sm:$0xf] }
  0xa4   : > { %1788 = vmatpush.bf16.msrb.mxu3 %v3059_v31 }
  0xba   : > { %v809_v58 = vpop.f32.mrf.mxu0 }
  0xbb   : > { %v810_v61 = vadd.f32 %v809_v58, %v465_v52  ;;  %v822_v62 = vpop.f32.mrf.mxu1  ;;  %v2710_v52 = vld [vmem:[#allocation4 + $0x48] sm:$0xf] }
  0xbc   : > { %v2711_v57 = vor.u32 %v3418_v53, %v2710_v52  ;;  %v2854_v58 = vld [vmem:[#allocation4 + $0x168] sm:$0xf] }
  0xbd   : > { %v823_v2 = vadd.f32 %v822_v62, %v810_v61  ;;  %v3414_v61 = vld [vmem:[#allocation4 + $0x34] sm:$0xf0]  ;;  %v2855_v63 = vor.u32 %v3454_v59, %v2854_v58 }
  0xbe   : > { %v3490_v59 = vld [vmem:[#allocation4 + $0x294] sm:$0xf0] }
  0xbf   : > { %v904_v9 = vmax.f32 %v823_v2, 0.0  ;;  %v2695_v2 = vor.u32 %v3414_v61, %v2694_v60  ;;  %v3424_v60 = vld [vmem:[#allocation4 + $0x8c] sm:$0xf]  ;;  %v2744_v61 = vld [vmem:[#allocation4 + $0x98] sm:$0xf0] }
  0xc1   : > { %v3916_v13 = vpack.c.bf16 %v904_v9, %v904_v9  ;;  %v3502_v9 = vld [vmem:[#allocation4 + $0x2f4] sm:$0xf0] }
  0xc2   : > { %v835_v14 = vpop.f32.mrf.mxu2  ;;  %v811_v20 = vpop.f32.mrf.mxu0 }
  0xc3   : > { %v836_v18 = vadd.f32 %v835_v14, %v466_v6  ;;  %v848_v19 = vpop.f32.mrf.mxu3  ;;  %1698 = vmatmul.bf16.vlgmr.msra.gmra.mxu0 %v3916_v13  ;;  %v824_v23 = vpop.f32.mrf.mxu1  ;;  %v3410_v6 = vld [vmem:[#allocation4 + $0x14] sm:$0xf0]  ;;  %v2839_v14 = vor.u32 %v3450_v4, %v2838_v3  ;;  %v2747_v3 = vor.u32 %v3424_v60, %v2744_v61 }
  0xc4   : > { %1794 = vmatpush.bf16.msra.mxu0 %v2791_v11  ;;  %v2792_v11 = vld [vmem:[#allocation4 + $0xf8] sm:$0xf0]  ;;  %v2679_v16 = vor.u32 %v3410_v6, %v2678_v5  ;;  %v3526_v4 = vld [vmem:[#allocation4 + $0x3b4] sm:$0xf0]  ;;  %v3460_v5 = vld [vmem:[#allocation4 + $0x1ac] sm:$0xf] }
  0xc5   : > { %v849_v24 = vadd.f32 %v848_v19, %v836_v18  ;;  %v3446_v18 = vld [vmem:[#allocation4 + $0x134] sm:$0xf0]  ;;  %v3047_v19 = vor.u32 %v3502_v9, %v3046_v7  ;;  %v2795_v20 = vor.u32 %v3436_v10, %v2792_v11  ;;  %v2888_v6 = vld [vmem:[#allocation4 + $0x1b8] sm:$0xf0]  ;;  %v3420_v7 = vld [vmem:[#allocation4 + $0x6c] sm:$0xf] }
  0xc6   : > { %v2823_v45 = vor.u32 %v3446_v18, %v2822_v17  ;;  %v2982_v9 = vld [vmem:[#allocation4 + $0x268] sm:$0xf]  ;;  %v3486_v10 = vld [vmem:[#allocation4 + $0x274] sm:$0xf0]  ;;  %v3456_v17 = vld [vmem:[#allocation4 + $0x18c] sm:$0xf] }
  0xc7   : > { %v905_v32 = vmax.f32 %v849_v24, 0.0  ;;  %v3498_v24 = vld [vmem:[#allocation4 + $0x2d4] sm:$0xf0]  ;;  %v2872_v18 = vld [vmem:[#allocation4 + $0x198] sm:$0xf0] }
  0xc8   : > { %1795 = vmatpush.bf16.msra.mxu0 %v2775_v25  ;;  %v3432_v25 = vld [vmem:[#allocation4 + $0xcc] sm:$0xf]  ;;  %v3031_v37 = vor.u32 %v3498_v24, %v3030_v21  ;;  %v2712_v21 = vld [vmem:[#allocation4 + $0x58] sm:$0xf0]  ;;  %v3482_v24 = vld [vmem:[#allocation4 + $0x254] sm:$0xf0] }
  0xc9   : > { %v3919_v34 = vpack.c.bf16 %v905_v32, %v905_v32  ;;  %v3442_v32 = vld [vmem:[#allocation4 + $0x114] sm:$0xf0] }
  0xca   : > { %v837_v38 = vpop.f32.mrf.mxu2  ;;  %v2807_v44 = vor.u32 %v3442_v32, %v2806_v30  ;;  %v2856_v30 = vld [vmem:[#allocation4 + $0x178] sm:$0xf0]  ;;  %v3412_v32 = vld [vmem:[#allocation4 + $0x2c] sm:$0xf] }
  0xcb   : > { %1711 = vmatmul.bf16.vlgmr.msra.gmra.mxu1 %v3919_v34  ;;  %v850_v40 = vpop.f32.mrf.mxu3  ;;  %v2779_v38 = vor.u32 %v3432_v25, %v2776_v26  ;;  %v2875_v26 = vor.u32 %v3456_v17, %v2872_v18  ;;  %v3488_v18 = vld [vmem:[#allocation4 + $0x28c] sm:$0xf] }
  0xcc   : > { %1807 = vmatpush.bf16.msra.mxu1 %v2919_v33  ;;  %1796 = vmatpush.bf16.msra.mxu0 %v2759_v35  ;;  %v3174_v33 = vld [vmem:[#allocation4 + $0x3e8] sm:$0xf]  ;;  %v3534_v35 = vld [vmem:[#allocation4 + $0x3f4] sm:$0xf0] }
  0xcd   : > { %v3014_v40 = vld [vmem:[#allocation4 + $0x2a8] sm:$0xf]  ;;  %v3175_v46 = vor.u32 %v3534_v35, %v3174_v33  ;;  %v2696_v33 = vld [vmem:[#allocation4 + $0x38] sm:$0xf0] }
  0xce   : > { %v2950_v35 = vld [vmem:[#allocation4 + $0x228] sm:$0xf] }
  0xd0   : > { %1808 = vmatpush.bf16.msra.mxu1 %v2903_v41  ;;  %1797 = vmatpush.bf16.msra.mxu0 %v2743_v42  ;;  %v3494_v41 = vld [vmem:[#allocation4 + $0x2b4] sm:$0xf0]  ;;  %v3428_v42 = vld [vmem:[#allocation4 + $0xac] sm:$0xf] }
  0xd1   : > { %v3015_v52 = vor.u32 %v3494_v41, %v3014_v40  ;;  %v2763_v53 = vor.u32 %v3428_v42, %v2760_v54  ;;  %v3514_v40 = vld [vmem:[#allocation4 + $0x354] sm:$0xf0]  ;;  %v3448_v41 = vld [vmem:[#allocation4 + $0x14c] sm:$0xf]  ;;  %v2840_v42 = vld [vmem:[#allocation4 + $0x158] sm:$0xf0] }
  0xd3   : > { %1750 = vmatmul.bf16.vlgmr.msrb.gmra.mxu0 %v3916_v13 }
  0xd4   : > { %1809 = vmatpush.bf16.msra.mxu1 %v2887_v47  ;;  %1798 = vmatpush.bf16.msra.mxu0 %v2727_v48  ;;  %v2923_v47 = vor.u32 %v3468_v39, %v2920_v50  ;;  %v3158_v48 = vld [vmem:[#allocation4 + $0x3c8] sm:$0xf]  ;;  %v2699_v50 = vor.u32 %v3412_v32, %v2696_v33  ;;  %v3516_v32 = vld [vmem:[#allocation4 + $0x36c] sm:$0xf]  ;;  %v3112_v33 = vld [vmem:[#allocation4 + $0x378] sm:$0xf0] }
  0xd5   : > { %v3094_v39 = vld [vmem:[#allocation4 + $0x348] sm:$0xf] }
  0xd8   : > { %1810 = vmatpush.bf16.msra.mxu1 %v2871_v55  ;;  %1799 = vmatpush.bf16.msra.mxu0 %v2711_v57  ;;  %v3464_v55 = vld [vmem:[#allocation4 + $0x1cc] sm:$0xf]  ;;  %v2998_v57 = vld [vmem:[#allocation4 + $0x288] sm:$0xf] }
  0xda   : > { %v861_v62 = vpop.f32.mrf.mxu0 }
  0xdb   : > { %v862_v0 = vadd.f32 %v861_v62, %v467_v56  ;;  %v874_v1 = vpop.f32.mrf.mxu1  ;;  %1763 = vmatmul.bf16.vlgmr.msrb.gmra.mxu1 %v3919_v34  ;;  %v2904_v56 = vld [vmem:[#allocation4 + $0x1d8] sm:$0xf0] }
  0xdc   : > { %1811 = vmatpush.bf16.msra.mxu1 %v2855_v63  ;;  %1800 = vmatpush.bf16.msra.mxu0 %v2695_v2  ;;  %v3159_v63 = vor.u32 %v3530_v49, %v3158_v48  ;;  %v2999_v2 = vor.u32 %v3490_v59, %v2998_v57  ;;  %v3095_v48 = vor.u32 %v3514_v40, %v3094_v39  ;;  %v3510_v57 = vld [vmem:[#allocation4 + $0x334] sm:$0xf0]  ;;  %v2824_v59 = vld [vmem:[#allocation4 + $0x138] sm:$0xf0]  ;;  %v3472_v40 = vld [vmem:[#allocation4 + $0x20c] sm:$0xf] }
  0xdd   : > { %v875_v8 = vadd.f32 %v874_v1, %v862_v0  ;;  %v2907_v0 = vor.u32 %v3464_v55, %v2904_v56  ;;  %v3142_v1 = vld [vmem:[#allocation4 + $0x3a8] sm:$0xf]  ;;  %v2843_v49 = vor.u32 %v3448_v41, %v2840_v42  ;;  %v3096_v39 = vld [vmem:[#allocation4 + $0x358] sm:$0xf0] }
  0xde   : > { %v3143_v11 = vor.u32 %v3526_v4, %v3142_v1  ;;  %v3078_v55 = vld [vmem:[#allocation4 + $0x328] sm:$0xf]  ;;  %v3032_v1 = vld [vmem:[#allocation4 + $0x2d8] sm:$0xf0]  ;;  %v3440_v4 = vld [vmem:[#allocation4 + $0x10c] sm:$0xf] }
  0xdf   : > { %v906_v15 = vmax.f32 %v875_v8, 0.0  ;;  %v2728_v8 = vld [vmem:[#allocation4 + $0x78] sm:$0xf0] }
  0xe0   : > { %1812 = vmatpush.bf16.msra.mxu1 %v2839_v14  ;;  %1801 = vmatpush.bf16.msra.mxu0 %v2679_v16  ;;  %v3126_v14 = vld [vmem:[#allocation4 + $0x388] sm:$0xf]  ;;  %v3522_v16 = vld [vmem:[#allocation4 + $0x394] sm:$0xf0]  ;;  %v2936_v41 = vld [vmem:[#allocation4 + $0x218] sm:$0xf0] }
  0xe1   : > { %v3926_v22 = vpack.c.bf16 %v906_v15, %v906_v15  ;;  %v2731_v15 = vor.u32 %v3420_v7, %v2728_v8  ;;  %v3127_v25 = vor.u32 %v3522_v16, %v3126_v14  ;;  %v3176_v7 = vld [vmem:[#allocation4 + $0x3f8] sm:$0xf0] }
  0xe2   : > { %v887_v23 = vpop.f32.mrf.mxu2  ;;  %v863_v29 = vpop.f32.mrf.mxu0  ;;  %v3160_v16 = vld [vmem:[#allocation4 + $0x3d8] sm:$0xf0] }
  0xe3   : > { %v888_v27 = vadd.f32 %v887_v23, %v468_v12  ;;  %v900_v28 = vpop.f32.mrf.mxu3  ;;  %v876_v31 = vpop.f32.mrf.mxu1  ;;  %1724 = vmatmul.bf16.vlgmr.msra.gmra.mxu2 %v3926_v22  ;;  %1802 = vmatmul.bf16.vlgmr.msra.gmra.mxu0 %v3916_v13  ;;  %v2891_v12 = vor.u32 %v3460_v5, %v2888_v6  ;;  %v2966_v23 = vld [vmem:[#allocation4 + $0x248] sm:$0xf]  ;;  %v3518_v29 = vld [vmem:[#allocation4 + $0x374] sm:$0xf0]  ;;  %v2808_v5 = vld [vmem:[#allocation4 + $0x118] sm:$0xf0] }
  0xe4   : > { %1820 = vmatpush.bf16.msra.mxu2 %v3047_v19  ;;  %1846 = vmatpush.bf16.msrb.mxu0 %v2795_v20  ;;  %v2983_v19 = vor.u32 %v3486_v10, %v2982_v9  ;;  %v3416_v20 = vld [vmem:[#allocation4 + $0x4c] sm:$0xf]  ;;  %v2967_v31 = vor.u32 %v3482_v24, %v2966_v23  ;;  %v2811_v10 = vor.u32 %v3440_v4, %v2808_v5  ;;  %v3144_v23 = vld [vmem:[#allocation4 + $0x3b8] sm:$0xf0] }
  0xe5   : > { %v901_v36 = vadd.f32 %v900_v28, %v888_v27  ;;  %1813 = vmatpush.bf16.msra.mxu1 %v2823_v45  ;;  %v3110_v27 = vld [vmem:[#allocation4 + $0x368] sm:$0xf]  ;;  %v2715_v28 = vor.u32 %v3416_v20, %v2712_v21  ;;  %v3452_v45 = vld [vmem:[#allocation4 + $0x16c] sm:$0xf]  ;;  %v3546_v4 = vld [vmem:[#allocation6 + $0x58] sm:$0xff] }
  0xe6   : > { %v3532_v6 = vld [vmem:[#allocation4 + $0x3ec] sm:$0xf]  ;;  %v3558_v5 = vld [vmem:[#allocation6 + $0xb8] sm:$0xff] }
  0xe7   : > { %v907_v43 = vmax.f32 %v901_v36, 0.0  ;;  %v3478_v36 = vld [vmem:[#allocation4 + $0x234] sm:$0xf0]  ;;  %v3179_v14 = vor.u32 %v3532_v6, %v3176_v7  ;;  %v3524_v21 = vld [vmem:[#allocation4 + $0x3ac] sm:$0xf]  ;;  %v3545_v6 = vld [vmem:[#allocation6 + $0x50] sm:$0xff] }
  0xe8   : > { %1821 = vmatpush.bf16.msra.mxu2 %v3031_v37  ;;  %1847 = vmatpush.bf16.msrb.mxu0 %v2779_v38  ;;  %v3111_v37 = vor.u32 %v3518_v29, %v3110_v27  ;;  %v2859_v38 = vor.u32 %v3452_v45, %v2856_v30  ;;  %v2951_v54 = vor.u32 %v3478_v36, %v2950_v35  ;;  %v3520_v27 = vld [vmem:[#allocation4 + $0x38c] sm:$0xf]  ;;  %v2968_v30 = vld [vmem:[#allocation4 + $0x258] sm:$0xf0]  ;;  %v3557_v7 = vld [vmem:[#allocation6 + $0xb0] sm:$0xff] }
  0xe9   : > { %v3930_v51 = vpack.c.bf16 %v907_v43, %v907_v43  ;;  %1814 = vmatpush.bf16.msra.mxu1 %v2807_v44  ;;  %v3408_v43 = vld [vmem:[#allocation4 + $0xc] sm:$0xf]  ;;  %v2680_v44 = vld [vmem:[#allocation4 + $0x18] sm:$0xf0] }
  0xea   : > { %v889_v58 = vpop.f32.mrf.mxu2  ;;  %v2683_v56 = vor.u32 %v3408_v43, %v2680_v44  ;;  %v3480_v45 = vld [vmem:[#allocation4 + $0x24c] sm:$0xf]  ;;  %v2952_v36 = vld [vmem:[#allocation4 + $0x238] sm:$0xf0]  ;;  %v2939_v44 = vor.u32 %v3472_v40, %v2936_v41  ;;  %v3563_v41 = vld [vmem:[#allocation6 + $0xe0] sm:$0xff] }
  0xeb   : > { %v902_v62 = vpop.f32.mrf.mxu3  ;;  %1737 = vmatmul.bf16.vlgmr.msra.gmra.mxu3 %v3930_v51  ;;  %v3444_v58 = vld [vmem:[#allocation4 + $0x12c] sm:$0xf]  ;;  %v3080_v43 = vld [vmem:[#allocation4 + $0x338] sm:$0xf0] }
  0xec   : > { %1833 = vmatpush.bf16.msra.mxu3 %v3175_v46  ;;  %1822 = vmatpush.bf16.msra.mxu2 %v3015_v52  ;;  %v2934_v46 = vld [vmem:[#allocation4 + $0x208] sm:$0xf]  ;;  %v3500_v52 = vld [vmem:[#allocation4 + $0x2ec] sm:$0xf]  ;;  %v3079_v62 = vor.u32 %v3510_v57, %v3078_v55 }
  0xed   : > { %1859 = vmatpush.bf16.msrb.mxu1 %v2923_v47  ;;  %1848 = vmatpush.bf16.msrb.mxu0 %v2763_v53  ;;  %v3474_v47 = vld [vmem:[#allocation4 + $0x214] sm:$0xf0]  ;;  %v3048_v53 = vld [vmem:[#allocation4 + $0x2f8] sm:$0xf0]  ;;  %v3476_v35 = vld [vmem:[#allocation4 + $0x22c] sm:$0xf] }
  0xee   : > { %1815 = vmatmul.bf16.vlgmr.msra.gmra.mxu1 %v3919_v34  ;;  %v2935_v60 = vor.u32 %v3474_v47, %v2934_v46  ;;  %v3051_v61 = vor.u32 %v3500_v52, %v3048_v53  ;;  %v3504_v47 = vld [vmem:[#allocation4 + $0x30c] sm:$0xf]  ;;  %v3542_v52 = vld [vmem:[#allocation6 + $0x38] sm:$0xff]  ;;  %v3541_v53 = vld [vmem:[#allocation6 + $0x30] sm:$0xff] }
  0xef   : > { %v3540_v55 = vld [vmem:[#allocation6 + $0x28] sm:$0xff] }
  0xf0   : > { %1834 = vmatpush.bf16.msra.mxu3 %v3159_v63  ;;  %1823 = vmatpush.bf16.msra.mxu2 %v2999_v2  ;;  %v2827_v63 = vor.u32 %v3444_v58, %v2824_v59  ;;  %v3062_v2 = vld [vmem:[#allocation4 + $0x308] sm:$0xf]  ;;  %v3538_v58 = vld [vmem:[#allocation6 + $0x18] sm:$0xff] }
  0xf1   : > { %1860 = vmatpush.bf16.msrb.mxu1 %v2907_v0  ;;  %1849 = vmatpush.bf16.msrb.mxu0 %v2747_v3  ;;  %v3496_v0 = vld [vmem:[#allocation4 + $0x2cc] sm:$0xf]  ;;  %v3506_v3 = vld [vmem:[#allocation4 + $0x314] sm:$0xf0] }
  0xf2   : > { %v3035_v8 = vor.u32 %v3496_v0, %v3032_v1  ;;  %v3063_v9 = vor.u32 %v3506_v3, %v3062_v2  ;;  %v3550_v59 = vld [vmem:[#allocation6 + $0x78] sm:$0xff]  ;;  %v3535_v0 = vld [vmem:[#allocation6] sm:$0xff] }
  0xf3   : > { %1776 = vmatmul.bf16.vlgmr.msrb.gmra.mxu2 %v3926_v22  ;;  %v3547_v1 = vld [vmem:[#allocation6 + $0x60] sm:$0xff] }
  0xf4   : > { %1835 = vmatpush.bf16.msra.mxu3 %v3143_v11  ;;  %1824 = vmatpush.bf16.msra.mxu2 %v2983_v19  ;;  %v3492_v11 = vld [vmem:[#allocation4 + $0x2ac] sm:$0xf]  ;;  %v3000_v19 = vld [vmem:[#allocation4 + $0x298] sm:$0xf0] }
  0xf5   : > { %1861 = vmatpush.bf16.msrb.mxu1 %v2891_v12  ;;  %1850 = vmatpush.bf16.msrb.mxu0 %v2731_v15  ;;  %v3016_v12 = vld [vmem:[#allocation4 + $0x2b8] sm:$0xf0]  ;;  %v3528_v15 = vld [vmem:[#allocation4 + $0x3cc] sm:$0xf]  ;;  %v3003_v24 = vor.u32 %v3488_v18, %v3000_v19 }
  0xf6   : > { %v3019_v17 = vor.u32 %v3492_v11, %v3016_v12  ;;  %v3163_v20 = vor.u32 %v3528_v15, %v3160_v16  ;;  %v3556_v11 = vld [vmem:[#allocation6 + $0xa8] sm:$0xff]  ;;  %v3945_v12 = vld [vmem:[%s3969_s4] sm:$0xf]  ;;  %v3554_v19 = vld [vmem:[#allocation6 + $0x98] sm:$0xff] }
  0xf7   : > { %v3555_v15 = vld [vmem:[#allocation6 + $0xa0] sm:$0xff]  ;;  %v1042_v16 = vperm.slane %v3945_v12, 0 }
  0xf8   : > { %1836 = vmatpush.bf16.msra.mxu3 %v3127_v25  ;;  %1825 = vmatpush.bf16.msra.mxu2 %v2967_v31  ;;  %v2984_v25 = vld [vmem:[#allocation4 + $0x278] sm:$0xf0] }
  0xf9   : > { %1862 = vmatpush.bf16.msrb.mxu1 %v2875_v26  ;;  %1851 = vmatpush.bf16.msrb.mxu0 %v2715_v28  ;;  %v3147_v26 = vor.u32 %v3524_v21, %v3144_v23  ;;  %v3128_v28 = vld [vmem:[#allocation4 + $0x398] sm:$0xf0]  ;;  %v3553_v23 = vld [vmem:[#allocation6 + $0x90] sm:$0xff] }
  0xfa   : > { %v3131_v31 = vor.u32 %v3520_v27, %v3128_v28  ;;  %v3552_v27 = vld [vmem:[#allocation6 + $0x88] sm:$0xff] }
  0xfb   : > { %1789 = vmatmul.bf16.vlgmr.msrb.gmra.mxu3 %v3930_v51 }
  0xfc   : > { %1837 = vmatpush.bf16.msra.mxu3 %v3111_v37  ;;  %1826 = vmatpush.bf16.msra.mxu2 %v2951_v54  ;;  %v3115_v37 = vor.u32 %v3516_v32, %v3112_v33  ;;  %v3508_v54 = vld [vmem:[#allocation4 + $0x32c] sm:$0xf]  ;;  %v3566_v32 = vld [vmem:[#allocation6 + $0xf8] sm:$0xff] }
  0xfd   : > { %1863 = vmatpush.bf16.msrb.mxu1 %v2859_v38  ;;  %1852 = vmatpush.bf16.msrb.mxu0 %v2699_v50  ;;  %v3512_v38 = vld [vmem:[#allocation4 + $0x34c] sm:$0xf]  ;;  %v2955_v50 = vor.u32 %v3476_v35, %v2952_v36  ;;  %v3083_v46 = vor.u32 %v3508_v54, %v3080_v43  ;;  %v1043_v35 = vperm.slane %v3945_v12, 1  ;;  %v3565_v36 = vld [vmem:[#allocation6 + $0xf0] sm:$0xff] }
  0xfe   : > { %v3099_v42 = vor.u32 %v3512_v38, %v3096_v39  ;;  %v3564_v38 = vld [vmem:[#allocation6 + $0xe8] sm:$0xff] }
 0x100   : > { %1838 = vmatpush.bf16.msra.mxu3 %v3095_v48  ;;  %1827 = vmatpush.bf16.msra.mxu2 %v2935_v60  ;;  %v3064_v48 = vld [vmem:[#allocation4 + $0x318] sm:$0xf0]  ;;  %v3537_v60 = vld [vmem:[#allocation6 + $0x10] sm:$0xff] }
 0x101   : > { %1864 = vmatpush.bf16.msrb.mxu1 %v2843_v49  ;;  %1853 = vmatpush.bf16.msrb.mxu0 %v2683_v56  ;;  %v3067_v49 = vor.u32 %v3504_v47, %v3064_v48  ;;  %v3539_v56 = vld [vmem:[#allocation6 + $0x20] sm:$0xff] }
 0x103   : > { %1828 = vmatmul.bf16.vlgmr.msra.gmra.mxu2 %v3926_v22 }
 0x104   : > { %1872 = vmatpush.bf16.msrb.mxu2 %v3051_v61  ;;  %1839 = vmatpush.bf16.msra.mxu3 %v3079_v62  ;;  %v3549_v61 = vld [vmem:[#allocation6 + $0x70] sm:$0xff] }
 0x105   : > { %1865 = vmatpush.bf16.msrb.mxu1 %v2827_v63  ;;  %1854 = vmatmul.bf16.vlgmr.msrb.gmra.mxu0 %v3916_v13  ;;  %v3484_v13 = vld [vmem:[#allocation4 + $0x26c] sm:$0xf] }
 0x106   : > { %v2987_v29 = vor.u32 %v3484_v13, %v2984_v25  ;;  %2166 = vmatpush.bf16.msra.mxu0 %v3542_v52  ;;  %v3548_v63 = vld [vmem:[#allocation6 + $0x68] sm:$0xff]  ;;  %v3561_v52 = vld [vmem:[#allocation6 + $0xd0] sm:$0xff] }
 0x108   : > { %1873 = vmatpush.bf16.msrb.mxu2 %v3035_v8  ;;  %1840 = vmatpush.bf16.msra.mxu3 %v3063_v9 }
 0x109   : > { %1866 = vmatpush.bf16.msrb.mxu1 %v2811_v10  ;;  %v3544_v10 = vld [vmem:[#allocation6 + $0x48] sm:$0xff] }
 0x10a   : > { %2167 = vmatpush.bf16.msra.mxu0 %v3541_v53  ;;  %v1044_v53 = vperm.slane %v3945_v12, 2 }
 0x10b   : > { %1841 = vmatmul.bf16.vlgmr.msra.gmra.mxu3 %v3930_v51 }
 0x10c   : > { %1885 = vmatpush.bf16.msrb.mxu3 %v3179_v14  ;;  %1867 = vmatmul.bf16.vlgmr.msrb.gmra.mxu1 %v3919_v34  ;;  %v2971_v34 = vor.u32 %v3480_v45, %v2968_v30  ;;  %v3543_v14 = vld [vmem:[#allocation6 + $0x40] sm:$0xff] }
 0x10d   : > { %1874 = vmatpush.bf16.msrb.mxu2 %v3019_v17  ;;  %2179 = vmatpush.bf16.msra.mxu1 %v3550_v59 }
 0x10e   : > { %2168 = vmatpush.bf16.msra.mxu0 %v3540_v55 }
 0x110   : > { %1886 = vmatpush.bf16.msrb.mxu3 %v3163_v20 }
 0x111   : > { %1875 = vmatpush.bf16.msrb.mxu2 %v3003_v24  ;;  %2180 = vmatpush.bf16.msra.mxu1 %v3549_v61 }
 0x112   : > { %2169 = vmatpush.bf16.msra.mxu0 %v3539_v56 }
 0x114   : > { %1887 = vmatpush.bf16.msrb.mxu3 %v3147_v26 }
 0x115   : > { %1876 = vmatpush.bf16.msrb.mxu2 %v2987_v29  ;;  %2181 = vmatpush.bf16.msra.mxu1 %v3548_v63 }
 0x116   : > { %2170 = vmatpush.bf16.msra.mxu0 %v3538_v58  ;;  %v3560_v58 = vld [vmem:[#allocation6 + $0xc8] sm:$0xff] }
 0x118   : > { %1888 = vmatpush.bf16.msrb.mxu3 %v3131_v31  ;;  %v3551_v31 = vld [vmem:[#allocation6 + $0x80] sm:$0xff] }
 0x119   : > { %1877 = vmatpush.bf16.msrb.mxu2 %v2971_v34  ;;  %2182 = vmatpush.bf16.msra.mxu1 %v3547_v1 }
 0x11a   : > { %2171 = vmatpush.bf16.msra.mxu0 %v3537_v60 }
 0x11c   : > { %1889 = vmatpush.bf16.msrb.mxu3 %v3115_v37 }
 0x11d   : > { %1878 = vmatpush.bf16.msrb.mxu2 %v2955_v50  ;;  %2183 = vmatpush.bf16.msra.mxu1 %v3546_v4 }
 0x120   : > { %1890 = vmatpush.bf16.msrb.mxu3 %v3099_v42 }
 0x121   : > { %1879 = vmatpush.bf16.msrb.mxu2 %v2939_v44  ;;  %2184 = vmatpush.bf16.msra.mxu1 %v3545_v6  ;;  %v3562_v44 = vld [vmem:[#allocation6 + $0xd8] sm:$0xff] }
 0x124   : > { %1891 = vmatpush.bf16.msrb.mxu3 %v3083_v46  ;;  %1880 = vmatmul.bf16.vlgmr.msrb.gmra.mxu2 %v3926_v22 }
 0x125   : > { %2192 = vmatpush.bf16.msra.mxu2 %v3558_v5  ;;  %2185 = vmatpush.bf16.msra.mxu1 %v3544_v10  ;;  %v1045_v5 = vperm.slane %v3945_v12, 3  ;;  %v3571_v12 = vld [vmem:[#allocation7 + $0x20] sm:$0xff] }
 0x128   : > { %1892 = vmatpush.bf16.msrb.mxu3 %v3067_v49 }
 0x129   : > { %2193 = vmatpush.bf16.msra.mxu2 %v3557_v7  ;;  %2186 = vmatpush.bf16.msra.mxu1 %v3543_v14 }
 0x12b   : > { %1893 = vmatmul.bf16.vlgmr.msrb.gmra.mxu3 %v3930_v51  ;;  %v3536_v51 = vld [vmem:[#allocation6 + $0x8] sm:$0xff] }
 0x12c   : > { %2172 = vmatpush.bf16.msra.mxu0 %v3536_v51  ;;  %2205 = vmatpush.bf16.msra.mxu3 %v3566_v32 }
 0x12d   : > { %2194 = vmatpush.bf16.msra.mxu2 %v3556_v11 }
 0x130   : > { %2173 = vmatpush.bf16.msra.mxu0 %v3535_v0  ;;  %2206 = vmatpush.bf16.msra.mxu3 %v3565_v36 }
 0x131   : > { %2195 = vmatpush.bf16.msra.mxu2 %v3555_v15 }
 0x134   : > { %2207 = vmatpush.bf16.msra.mxu3 %v3564_v38 }
 0x135   : > { %2196 = vmatpush.bf16.msra.mxu2 %v3554_v19 }
 0x138   : > { %2208 = vmatpush.bf16.msra.mxu3 %v3563_v41 }
 0x139   : > { %2197 = vmatpush.bf16.msra.mxu2 %v3553_v23  ;;  %v3572_v23 = vld [vmem:[#allocation7 + $0x28] sm:$0xff] }
 0x13c   : > { %2209 = vmatpush.bf16.msra.mxu3 %v3562_v44 }
 0x13d   : > { %2198 = vmatpush.bf16.msra.mxu2 %v3552_v27  ;;  %v3568_v27 = vld [vmem:[#allocation7 + $0x8] sm:$0xff] }
 0x140   : > { %v1699_v57 = vpop.f32.mrf.mxu0  ;;  %2210 = vmatpush.bf16.msra.mxu3 %v3561_v52 }
 0x141   : > { %v1700_v20 = vadd.f32 %v1699_v57, %v1042_v16  ;;  %2199 = vmatpush.bf16.msra.mxu2 %v3551_v31 }
 0x144   : > { %2211 = vmatpush.bf16.msra.mxu3 %v3560_v58 }
 0x148   : > { %v1712_v62 = vpop.f32.mrf.mxu1  ;;  %v1701_v22 = vpop.f32.mrf.mxu0 }
 0x149   : > { %v1713_v24 = vadd.f32 %v1712_v62, %v1700_v20  ;;  %v3559_v62 = vld [vmem:[#allocation6 + $0xc0] sm:$0xff]  ;;  %v3574_v20 = vld [vmem:[#allocation7 + $0x38] sm:$0xff] }
 0x14a   : > { %2212 = vmatpush.bf16.msra.mxu3 %v3559_v62  ;;  %2288 = vmatpush.bf16.msrb.mxu0 %v3574_v20 }
 0x150   : > { %v1714_v2 = vpop.f32.mrf.mxu1  ;;  %v1751_v3 = vpop.f32.mrf.mxu0 }
 0x151   : > { %v1752_v50 = vadd.f32 %v1751_v3, %v1043_v35 }
 0x158   : > { %v1764_v8 = vpop.f32.mrf.mxu1  ;;  %v1753_v9 = vpop.f32.mrf.mxu0 }
 0x159   : > { %v1765_v40 = vadd.f32 %v1764_v8, %v1752_v50 }
 0x160   : > { %v1766_v17 = vpop.f32.mrf.mxu1  ;;  %v1803_v18 = vpop.f32.mrf.mxu0 }
 0x161   : > { %v1804_v59 = vadd.f32 %v1803_v18, %v1044_v53 }
 0x166   : > { %v1725_v21 = vpop.f32.mrf.mxu2 }
 0x167   : > { %v1726_v26 = vadd.f32 %v1725_v21, %v1713_v24  ;;  %v3573_v21 = vld [vmem:[#allocation7 + $0x30] sm:$0xff] }
 0x168   : > { %v1805_v25 = vpop.f32.mrf.mxu0  ;;  %2289 = vmatpush.bf16.msrb.mxu0 %v3573_v21 }
 0x16b   : > { %v1816_v13 = vpop.f32.mrf.mxu1 }
 0x16c   : > { %v1817_v61 = vadd.f32 %v1816_v13, %v1804_v59  ;;  %2290 = vmatpush.bf16.msrb.mxu0 %v3572_v23  ;;  %v3570_v13 = vld [vmem:[#allocation7 + $0x18] sm:$0xff] }
 0x16e   : > { %v1738_v28 = vpop.f32.mrf.mxu3  ;;  %v1727_v45 = vpop.f32.mrf.mxu2 }
 0x16f   : > { %v1739_v29 = vadd.f32 %v1738_v28, %v1726_v26  ;;  %v3569_v26 = vld [vmem:[#allocation7 + $0x10] sm:$0xff]  ;;  %v3567_v28 = vld [vmem:[#allocation7] sm:$0xff] }
 0x170   : > { %2291 = vmatpush.bf16.msrb.mxu0 %v3571_v12 }
 0x171   : > { %v1898_v30 = vmax.f32 %v1739_v29, 0.0 }
 0x173   : > { %v1902_v33 = vpack.c.bf16 %v1898_v30, %v1898_v30  ;;  %v1818_v34 = vpop.f32.mrf.mxu1  ;;  %v3628_v30 = vld [vmem:[%s3971_s6] ss:$0 sm:$0xff] }
 0x174   : > { %2292 = vmatpush.bf16.msrb.mxu0 %v3570_v13 }
 0x175   : > { %2174 = vmatmul.bf16.vlgmr.msra.gmra.mxu0 %v1902_v33 }
 0x176   : > { %v1740_v37 = vpop.f32.mrf.mxu3  ;;  %v1777_v39 = vpop.f32.mrf.mxu2 }
 0x177   : > { %v1778_v42 = vadd.f32 %v1777_v39, %v1765_v40  ;;  %v3629_v39 = vld [vmem:[%s3973_s8] ss:$0 sm:$0xff] }
 0x178   : > { %2293 = vmatpush.bf16.msrb.mxu0 %v3569_v26 }
 0x17c   : > { %2294 = vmatpush.bf16.msrb.mxu0 %v3568_v27 }
 0x17e   : > { %v1790_v54 = vpop.f32.mrf.mxu3  ;;  %v1779_v46 = vpop.f32.mrf.mxu2 }
 0x17f   : > { %v1791_v43 = vadd.f32 %v1790_v54, %v1778_v42 }
 0x180   : > { %2295 = vmatpush.bf16.msrb.mxu0 %v3567_v28 }
 0x181   : > { %v1899_v47 = vmax.f32 %v1791_v43, 0.0 }
 0x182   : > { %v1855_v48 = vpop.f32.mrf.mxu0 }
 0x183   : > { %v1903_v49 = vpack.c.bf16 %v1899_v47, %v1899_v47  ;;  %v1856_v7 = vadd.f32 %v1855_v48, %v1045_v5 }
 0x185   : > { %2187 = vmatmul.bf16.vlgmr.msra.gmra.mxu1 %v1903_v49 }
 0x186   : > { %v1792_v55 = vpop.f32.mrf.mxu3  ;;  %v1829_v57 = vpop.f32.mrf.mxu2 }
 0x187   : > { %v1830_v22 = vadd.f32 %v1829_v57, %v1817_v61 }
 0x189   : > { %v1868_v56 = vpop.f32.mrf.mxu1 }
 0x18a   : > { %v1857_v60 = vpop.f32.mrf.mxu0  ;;  %v1869_v8 = vadd.f32 %v1868_v56, %v1856_v7 }
 0x18e   : > { %v1842_v51 = vpop.f32.mrf.mxu3  ;;  %v1831_v1 = vpop.f32.mrf.mxu2 }
 0x18f   : > { %v1843_v63 = vadd.f32 %v1842_v51, %v1830_v22 }
 0x191   : > { %v1870_v0 = vpop.f32.mrf.mxu1  ;;  %v1900_v2 = vmax.f32 %v1843_v63, 0.0 }
 0x193   : > { %v1904_v3 = vpack.c.bf16 %v1900_v2, %v1900_v2 }
 0x195   : > { %2200 = vmatmul.bf16.vlgmr.msra.gmra.mxu2 %v1904_v3 }
 0x196   : > { %v1844_v4 = vpop.f32.mrf.mxu3 }
 0x1a7   : > { %v1881_v6 = vpop.f32.mrf.mxu2 }
 0x1a8   : > { %v1882_v9 = vadd.f32 %v1881_v6, %v1869_v8 }
 0x1ae   : > { %v1894_v10 = vpop.f32.mrf.mxu3 }
 0x1af   : > { %v1895_v11 = vadd.f32 %v1894_v10, %v1882_v9  ;;  %v1883_v14 = vpop.f32.mrf.mxu2 }
 0x1b1   : > { %v1901_v15 = vmax.f32 %v1895_v11, 0.0 }
 0x1b3   : > { %v1905_v16 = vpack.c.bf16 %v1901_v15, %v1901_v15 }
 0x1b5   : > { %2213 = vmatmul.bf16.vlgmr.msra.gmra.mxu3 %v1905_v16 }
 0x1b6   : > { %v1896_v17 = vpop.f32.mrf.mxu3 }
 0x1f2   : > { %v2175_v18 = vpop.f32.mrf.mxu0 }
 0x1f3   : > { %v2176_v31 = vadd.f32 %v3628_v30, %v2175_v18 }
 0x1fa   : > { %v2177_v19 = vpop.f32.mrf.mxu0 }
 0x202   : > { %v2188_v24 = vpop.f32.mrf.mxu1 }
 0x203   : > { %v2189_v32 = vadd.f32 %v2188_v24, %v2176_v31 }
 0x20a   : > { %v2190_v25 = vpop.f32.mrf.mxu1 }
 0x218   : > { %v2201_v29 = vpop.f32.mrf.mxu2 }
 0x219   : > { %v2202_v33 = vadd.f32 %v2201_v29, %v2189_v32 }
 0x220   : > { %v2203_v45 = vpop.f32.mrf.mxu2 }
 0x238   : > { %v2214_v34 = vpop.f32.mrf.mxu3 }
 0x239   : > { %v2215_v35 = vadd.f32 %v2214_v34, %v2202_v33 }
 0x23b   : > { %v2218_v36 = vmax.f32 %v2215_v35, 0.0 }
 0x23d   : > { %v2219_v37 = vpack.c.bf16 %v2218_v36, %v2218_v36 }
 0x23f   : > { %2296 = vmatmul.bf16.vlgmr.msrb.gmra.mxu0 %v2219_v37 }
 0x240   : > { %v2216_v38 = vpop.f32.mrf.mxu3 }
 0x2bc   : > { %v2297_v50 = vpop.f32.mrf.mxu0 }
 0x2bd   : > { %v2298_v40 = vadd.f32 %v3629_v39, %v2297_v50 }
 0x2bf   : > { %2301 = vst [vmem:[%s397_s15] sm:$0xff] %v2298_v40 }
 0x2c4   : > { %v2299_v41 = vpop.f32.mrf.mxu0 }
 0x2c5 PF: > { %s22_s30 = sadd.s32 1, %s3768_s30  }
 0x2c6   : > { %p19_p7 = scmp.ge.s32.totalorder %s22_s30, 4  }
 0x2c8   :  { %21 = sbr.rel (!%p19_p7) target bundleno = 3 (0x3), region = 103 }
 0x2cd   :  { %2321 = vsyncpa [#allocation3], 1 }
 0x2ce   :  { %2323 = vsyncpa [#allocation3 + $0x1], 1 }
 0x2cf   :  { %2324 = vsyncpa [#allocation5], 1 }
 0x2d0   :  { %2325 = vsyncpa [#allocation8], 1 }

</bundles_post_ra>
